<compile_context>
chip_gen: v5e
topology: v5e:2x2
jax: 0.10.0
libtpu: 0.0.40
codegen_flags: <defaults>
</compile_context>

<pallas_src>
import functools

import jax
import jax.numpy as jnp
from jax.experimental import pallas as pl
from jax.experimental.pallas import tpu as pltpu


# ---------------------------------------------------------------------------
# Helpers
# ---------------------------------------------------------------------------
def _round_up(v, m):
    return ((v + m - 1) // m) * m


def _pad2d(a, rows, cols):
    r, c = a.shape
    if r == rows and c == cols:
        return a
    return jnp.pad(a, ((0, rows - r), (0, cols - c)))


def _vmem_capacity_bytes():
    """Physical VMEM per TensorCore; conservative (v7x) fallback."""
    try:
        return int(pltpu.get_tpu_info().vmem_capacity_bytes)
    except Exception:
        return 64 * 1024 * 1024


# ---------------------------------------------------------------------------
# Fused whole-model kernel (small graphs): all 5 GCN layers in one launch.
# mu / logvar share one matmul via the concatenated weight Wmu||Wlv.
# Encoder operands arrive in bf16 (MXU fast path); decoder operands (pinv
# adjacency) stay f32 because pinv's dynamic range amplifies rounding error.
# ---------------------------------------------------------------------------
def _invae_fused_kernel(x_ref, adj_ref, inv_ref,
                        w1_ref, b1_ref, wml_ref, bml_ref,
                        wd1_ref, bd1_ref, wd2_ref, bd2_ref,
                        rec_ref, mu_ref, lv_ref, *, lpad, enc_dtype, dec_dtype):
    adj = adj_ref[...]          # enc_dtype (bf16 by default)
    inv = inv_ref[...]          # dec_dtype (f32 by default)

    # Encoder gc1: relu(adj @ (x @ W1) + b1)
    xw = jnp.dot(x_ref[...], w1_ref[...], preferred_element_type=jnp.float32)
    h = jnp.dot(adj, xw.astype(enc_dtype),
                preferred_element_type=jnp.float32) + b1_ref[...]
    h = jnp.maximum(h, 0.0)

    # Encoder gc_mu + gc_logvar fused: single matmul against Wmu||Wlv
    hw = jnp.dot(h.astype(enc_dtype), wml_ref[...],
                 preferred_element_type=jnp.float32)
    mlv = jnp.dot(adj, hw.astype(enc_dtype),
                  preferred_element_type=jnp.float32) + bml_ref[...]
    mu = mlv[:, :lpad]
    logvar = mlv[:, lpad:]

    # z = mu (eval-mode reparameterize); Decoder gc1: relu(inv @ (z @ Wd1) + bd1)
    zw = jnp.dot(mu.astype(dec_dtype), wd1_ref[...],
                 preferred_element_type=jnp.float32)
    hd = jnp.dot(inv, zw.astype(dec_dtype),
                 preferred_element_type=jnp.float32) + bd1_ref[...]
    hd = jnp.maximum(hd, 0.0)

    # Decoder gc2: sigmoid(inv @ (hd @ Wd2) + bd2)
    hw2 = jnp.dot(hd.astype(dec_dtype), wd2_ref[...],
                  preferred_element_type=jnp.float32)
    rec = jnp.dot(inv, hw2.astype(dec_dtype),
                  preferred_element_type=jnp.float32) + bd2_ref[...]
    rec = jax.nn.sigmoid(rec)

    rec_ref[...] = rec.astype(rec_ref.dtype)
    mu_ref[...] = mu.astype(mu_ref.dtype)
    lv_ref[...] = logvar.astype(lv_ref.dtype)


def _fused_footprint_bytes(n, f, h_dim, l_dim, enc_dtype, dec_dtype):
    npad = _round_up(max(n, 1), 128)
    fpad = _round_up(f, 128)
    hpad = _round_up(h_dim, 128)
    lpad = _round_up(l_dim, 128)
    e_enc = jnp.dtype(enc_dtype).itemsize
    e_dec = jnp.dtype(dec_dtype).itemsize
    inputs = (npad * npad * (e_enc + e_dec)                      # adj + inv
              + npad * fpad * e_enc                              # x
              + fpad * hpad * e_enc + hpad * 2 * lpad * e_enc    # W1, Wmu||Wlv
              + lpad * hpad * e_dec + hpad * fpad * e_dec        # Wd1, Wd2
              + 4 * (2 * hpad + 2 * lpad + fpad))                # biases (f32)
    outputs = 4 * (npad * fpad + 2 * npad * lpad)
    # f32 intermediates (h, mlv, hd, rec) with 2x slack for temporaries/casts.
    inter = 4 * npad * (hpad + 2 * lpad + hpad + fpad) * 2
    return inputs + outputs + inter


def invae_forward_fused(params, x, adj_norm, inv_adj,
                        enc_dtype=jnp.bfloat16, dec_dtype=jnp.float32):
    n, f = x.shape
    h_dim = params["enc_w1"].shape[1]
    l_dim = params["enc_wmu"].shape[1]

    npad = _round_up(n, 128)      # node axis is also the MXU contraction axis
    fpad = _round_up(f, 128)
    hpad = _round_up(h_dim, 128)
    lpad = _round_up(l_dim, 128)

    # Pad + cast fused into one wrapper op chain: only the narrow (bf16)
    # copies of the big NxN operands are ever DMA'd / held in VMEM.
    xp = _pad2d(x, npad, fpad).astype(enc_dtype)
    adjp = _pad2d(adj_norm, npad, npad).astype(enc_dtype)
    invp = _pad2d(inv_adj, npad, npad).astype(dec_dtype)   # pinv: keep f32

    w1 = _pad2d(params["enc_w1"], fpad, hpad).astype(enc_dtype)
    b1 = _pad2d(params["enc_b1"].reshape(1, -1), 1, hpad)
    wml = jnp.concatenate([_pad2d(params["enc_wmu"], hpad, lpad),
                           _pad2d(params["enc_wlv"], hpad, lpad)],
                          axis=1).astype(enc_dtype)
    bml = jnp.concatenate([_pad2d(params["enc_bmu"].reshape(1, -1), 1, lpad),
                           _pad2d(params["enc_blv"].reshape(1, -1), 1, lpad)],
                          axis=1)
    wd1 = _pad2d(params["dec_w1"], lpad, hpad).astype(dec_dtype)
    bd1 = _pad2d(params["dec_b1"].reshape(1, -1), 1, hpad)
    wd2 = _pad2d(params["dec_w2"], hpad, fpad).astype(dec_dtype)
    bd2 = _pad2d(params["dec_b2"].reshape(1, -1), 1, fpad)

    vmem = pl.BlockSpec(memory_space=pltpu.MemorySpace.VMEM)
    kernel = functools.partial(_invae_fused_kernel, lpad=lpad,
                               enc_dtype=enc_dtype, dec_dtype=dec_dtype)

    cap = _vmem_capacity_bytes()
    vmem_limit = int(min(0.6 * cap, 100 * 1024 * 1024))   # <= ~38 MiB on v7x

    e_enc = jnp.dtype(enc_dtype).itemsize
    e_dec = jnp.dtype(dec_dtype).itemsize
    flops = (2 * npad * (fpad * hpad + 2 * hpad * lpad + lpad * hpad + hpad * fpad)
             + 2 * npad * npad * (hpad + 2 * lpad + hpad + fpad))
    bytes_accessed = int(
        e_enc * (npad * fpad + npad * npad + fpad * hpad + hpad * 2 * lpad)
        + e_dec * (npad * npad + lpad * hpad + hpad * fpad)
        + 4 * (2 * hpad + 2 * lpad + fpad)
        + 4 * (npad * fpad + 2 * npad * lpad))

    rec, mu, logvar = pl.pallas_call(
        kernel,
        out_shape=(jax.ShapeDtypeStruct((npad, fpad), jnp.float32),
                   jax.ShapeDtypeStruct((npad, lpad), jnp.float32),
                   jax.ShapeDtypeStruct((npad, lpad), jnp.float32)),
        in_specs=[vmem] * 11,
        out_specs=(vmem, vmem, vmem),
        compiler_params=pltpu.CompilerParams(vmem_limit_bytes=vmem_limit),
        cost_estimate=pl.CostEstimate(flops=flops,
                                      transcendentals=npad * fpad,
                                      bytes_accessed=bytes_accessed),
    )(xp, adjp, invp, w1, b1, wml, bml, wd1, bd1, wd2, bd2)

    rec = rec[:n, :f]
    mu = mu[:n, :l_dim]
    logvar = logvar[:n, :l_dim]
    return {"recon_feat": rec, "z": mu, "mu": mu, "logvar": logvar}


# ---------------------------------------------------------------------------
# Tiled single-call GCN layer (large graphs): out = act(adj @ (x @ w) + b)
#   Stage 1 (X @ W) runs once at grid step (0,0) into a VMEM-resident scratch
#   H (no HBM round trip).  Stage 2 streams the NxN adjacency exactly once
#   (output tile = full padded width -> lane-dense stores) and k-accumulates
#   into an f32 scratch with pl.when init/finalize.
# ---------------------------------------------------------------------------
def _gcn_layer_kernel(x_ref, w_ref, bias_ref, adj_ref, o_ref, h_ref, acc_ref,
                      *, activation, tk):
    i = pl.program_id(0)
    k = pl.program_id(1)

    # Stage 1: H = X @ W, computed once and kept resident in VMEM.
    @pl.when((i == 0) & (k == 0))
    def _():
        h_ref[...] = jnp.dot(x_ref[...], w_ref[...],
                             preferred_element_type=jnp.float32
                             ).astype(h_ref.dtype)

    @pl.when(k == 0)
    def _():
        acc_ref[...] = jnp.zeros_like(acc_ref)

    off = pl.multiple_of(k * tk, tk)
    acc_ref[...] += jnp.dot(adj_ref[...], h_ref[pl.ds(off, tk), :],
                            preferred_element_type=jnp.float32)

    @pl.when(k == pl.num_programs(1) - 1)
    def _():
        out = acc_ref[...] + bias_ref[...]          # bias / activation in f32
        if activation == "relu":
            out = jnp.maximum(out, 0.0)
        elif activation == "sigmoid":
            out = jax.nn.sigmoid(out)
        o_ref[...] = out.astype(o_ref.dtype)


def gcn_layer_tiled(x, w, b, adj, activation="none",
                    mxu_dtype=jnp.bfloat16, tile=256):
    """One DenseGCNConv layer as a single pallas_call."""
    n, din = x.shape
    dout = w.shape[1]
    tile = min(tile, _round_up(n, 128))
    npad = _round_up(n, tile)
    dinp = _round_up(din, 128)
    doutp = _round_up(dout, 128)

    xp = _pad2d(x, npad, dinp).astype(mxu_dtype)
    wp = _pad2d(w, dinp, doutp).astype(mxu_dtype)
    bp = _pad2d(b.astype(jnp.float32).reshape(1, -1), 1, doutp)
    adjp = _pad2d(adj, npad, npad).astype(mxu_dtype)   # no-op if pre-cast

    grid = (npad // tile, npad // tile)
    kernel = functools.partial(_gcn_layer_kernel, activation=activation, tk=tile)

    esz = jnp.dtype(mxu_dtype).itemsize
    cap = _vmem_capacity_bytes()
    vmem_limit = int(min(0.6 * cap, 100 * 1024 * 1024))
    # TODO(synk): graphs where the resident X / H (npad x dinp / npad x doutp)
    # no longer fit in VMEM need a third grid axis over Din; not needed here.

    out = pl.pallas_call(
        kernel,
        out_shape=jax.ShapeDtypeStruct((npad, doutp), jnp.float32),
        grid_spec=pltpu.PrefetchScalarGridSpec(
            num_scalar_prefetch=0,
            grid=grid,
            in_specs=[
                pl.BlockSpec((npad, dinp), lambda i, k: (0, 0)),   # X (resident)
                pl.BlockSpec((dinp, doutp), lambda i, k: (0, 0)),  # W (resident)
                pl.BlockSpec((1, doutp), lambda i, k: (0, 0)),     # bias
                pl.BlockSpec((tile, tile), lambda i, k: (i, k)),   # adj (streamed once)
            ],
            out_specs=pl.BlockSpec((tile, doutp), lambda i, k: (i, 0)),
            scratch_shapes=[pltpu.VMEM((npad, doutp), mxu_dtype),      # resident H
                            pltpu.VMEM((tile, doutp), jnp.float32)]),  # f32 acc
        compiler_params=pltpu.CompilerParams(
            # Both axes "arbitrary": the resident-H scratch is filled at grid
            # step (0,0), so the row axis must not be sharded across cores.
            dimension_semantics=("arbitrary", "arbitrary"),
            vmem_limit_bytes=vmem_limit),
        cost_estimate=pl.CostEstimate(
            flops=2 * npad * dinp * doutp + 2 * npad * npad * doutp,
            transcendentals=npad * doutp if activation == "sigmoid" else 0,
            bytes_accessed=int(esz * (npad * dinp + dinp * doutp + npad * npad)
                               + 4 * (doutp + npad * doutp))),
    )(xp, wp, bp, adjp)
    return out[:n, :dout]


def invae_forward_tiled(params, x, adj_norm, inv_adj,
                        enc_dtype=jnp.bfloat16, dec_dtype=jnp.float32, tile=256):
    l_dim = params["enc_wmu"].shape[1]

    # Hoisted adjacency casts: adj_norm -> enc_dtype once (shared by both
    # encoder layers).  inv_adj = pinv(adj_norm) stays f32: its dynamic range
    # amplifies bf16 rounding through the decoder (this is what broke the
    # previous bf16 tiled path).
    adj_c = adj_norm.astype(enc_dtype)
    inv_c = inv_adj.astype(dec_dtype)

    h = gcn_layer_tiled(x, params["enc_w1"], params["enc_b1"], adj_c,
                        "relu", enc_dtype, tile)
    # Fuse gc_mu and gc_logvar: one pass over adj_norm with Wmu||Wlv.
    wml = jnp.concatenate([params["enc_wmu"], params["enc_wlv"]], axis=1)
    bml = jnp.concatenate([params["enc_bmu"], params["enc_blv"]], axis=0)
    mlv = gcn_layer_tiled(h, wml, bml, adj_c, "none", enc_dtype, tile)
    mu, logvar = mlv[:, :l_dim], mlv[:, l_dim:]

    z = mu  # eval-mode reparameterize
    hd = gcn_layer_tiled(z, params["dec_w1"], params["dec_b1"], inv_c,
                         "relu", dec_dtype, tile)
    rec = gcn_layer_tiled(hd, params["dec_w2"], params["dec_b2"], inv_c,
                          "sigmoid", dec_dtype, tile)
    return {"recon_feat": rec, "z": z, "mu": mu, "logvar": logvar}


def invae_forward(params, x, adj_norm, inv_adj,
                  enc_dtype=jnp.bfloat16, dec_dtype=jnp.float32):
    """Footprint-aware dispatch: fused single launch when it fits VMEM, else tiled."""
    n, f = x.shape
    h_dim = params["enc_w1"].shape[1]
    l_dim = params["enc_wmu"].shape[1]
    cap = _vmem_capacity_bytes()
    foot = _fused_footprint_bytes(n, f, h_dim, l_dim, enc_dtype, dec_dtype)
    if foot <= 0.5 * cap:
        return invae_forward_fused(params, x, adj_norm, inv_adj, enc_dtype, dec_dtype)
    return invae_forward_tiled(params, x, adj_norm, inv_adj, enc_dtype, dec_dtype)


# ---------------------------------------------------------------------------
# Parameter init (glorot-uniform weights, zero bias) — deterministic
# ---------------------------------------------------------------------------
def glorot(key, din, dout):
    limit = jnp.sqrt(6.0 / (din + dout))
    return jax.random.uniform(key, (din, dout), jnp.float32, -limit, limit)


def init_invae_params(key, num_features, nhid, latent_dim):
    ks = jax.random.split(key, 5)
    return {
        "enc_w1": glorot(ks[0], num_features, nhid),
        "enc_b1": jnp.zeros((nhid,), jnp.float32),
        "enc_wmu": glorot(ks[1], nhid, latent_dim),
        "enc_bmu": jnp.zeros((latent_dim,), jnp.float32),
        "enc_wlv": glorot(ks[2], nhid, latent_dim),
        "enc_blv": jnp.zeros((latent_dim,), jnp.float32),
        "dec_w1": glorot(ks[3], latent_dim, nhid),
        "dec_b1": jnp.zeros((nhid,), jnp.float32),
        "dec_w2": glorot(ks[4], nhid, num_features),
        "dec_b2": jnp.zeros((num_features,), jnp.float32),
    }


# ---------------------------------------------------------------------------
# Pure-JAX reference (for correctness checks)
# ---------------------------------------------------------------------------
def invae_reference(params, x, adj, inv_adj):
    def gcn(xx, w, b, a):
        return a @ (xx @ w) + b
    h = jax.nn.relu(gcn(x, params["enc_w1"], params["enc_b1"], adj))
    mu = gcn(h, params["enc_wmu"], params["enc_bmu"], adj)
    logvar = gcn(h, params["enc_wlv"], params["enc_blv"], adj)
    hd = jax.nn.relu(gcn(mu, params["dec_w1"], params["dec_b1"], inv_adj))
    rec = jax.nn.sigmoid(gcn(hd, params["dec_w2"], params["dec_b2"], inv_adj))
    return rec, mu, logvar


# ---------------------------------------------------------------------------
# Graph data construction (synthetic, deterministic)
# ---------------------------------------------------------------------------
def make_graph(key, num_nodes, num_features, self_loop=0.7):
    k_adj, k_x = jax.random.split(key)
    logits = jax.random.uniform(k_adj, (num_nodes, num_nodes))
    a = (logits > 0.7).astype(jnp.float32)
    a = jnp.maximum(a, a.T)
    a = a * (1.0 - jnp.eye(num_nodes))
    deg = jnp.maximum(jnp.sum(a, axis=1), 1.0)
    d_inv_sqrt = 1.0 / jnp.sqrt(deg)
    s = a * d_inv_sqrt[:, None] * d_inv_sqrt[None, :]
    # Lazy-walk normalized adjacency with weighted self-loops: spectrum of s is
    # in [-1, 1], so adj_norm's spectrum is in [2a-1, 1]; this keeps A_hat well
    # conditioned so pinv(A_hat) (the decoder operator) is numerically meaningful.
    adj_norm = self_loop * jnp.eye(num_nodes) + (1.0 - self_loop) * s
    # torch.linalg.pinv equivalent stays in JAX glue (SVD has no Pallas path).
    inv_adj = jnp.linalg.pinv(adj_norm)
    x = jax.random.normal(k_x, (num_nodes, num_features), jnp.float32)
    return x, adj_norm, inv_adj


def _rel_err(a, b):
    return float(jnp.linalg.norm(a - b) / jnp.maximum(jnp.linalg.norm(b), 1e-6))


if __name__ == "__main__":
    NUM_NODES = 16
    NUM_FEATURES = 8
    NHID = 32
    LATENT_DIM = 16

    key = jax.random.PRNGKey(0)
    k_graph, k_params, k_graph_big = jax.random.split(key, 3)

    # ---- small graph: fully fused single-launch path -----------------------
    x, adj_norm, inv_adj = make_graph(k_graph, NUM_NODES, NUM_FEATURES)
    params = init_invae_params(k_params, NUM_FEATURES, NHID, LATENT_DIM)

    fwd = jax.jit(invae_forward)
    out = fwd(params, x, adj_norm, inv_adj)
    jax.block_until_ready(out)

    ref_rec, ref_mu, ref_lv = invae_reference(params, x, adj_norm, inv_adj)

    assert out["recon_feat"].shape == (NUM_NODES, NUM_FEATURES)
    assert out["mu"].shape == (NUM_NODES, LATENT_DIM)
    assert out["logvar"].shape == (NUM_NODES, LATENT_DIM)
    assert out["z"].shape == (NUM_NODES, LATENT_DIM)
    assert bool(jnp.all(jnp.isfinite(out["recon_feat"])))
    assert bool(jnp.all((out["recon_feat"] >= 0.0) & (out["recon_feat"] <= 1.0)))
    assert _rel_err(out["mu"], ref_mu) < 5e-2
    assert _rel_err(out["logvar"], ref_lv) < 5e-2
    assert _rel_err(out["recon_feat"], ref_rec) < 1e-1

    # ---- larger graph: tiled path (grid + k-accumulation, resident H) ------
    N_BIG = 256
    xb, adjb, invb = make_graph(k_graph_big, N_BIG, NUM_FEATURES)
    fwd_tiled = jax.jit(invae_forward_tiled)
    out_big = fwd_tiled(params, xb, adjb, invb)
    jax.block_until_ready(out_big)

    ref_rec_b, ref_mu_b, ref_lv_b = invae_reference(params, xb, adjb, invb)
    assert out_big["recon_feat"].shape == (N_BIG, NUM_FEATURES)
    assert out_big["mu"].shape == (N_BIG, LATENT_DIM)
    assert bool(jnp.all(jnp.isfinite(out_big["recon_feat"])))
    assert bool(jnp.all((out_big["recon_feat"] >= 0.0) & (out_big["recon_feat"] <= 1.0)))
    assert _rel_err(out_big["mu"], ref_mu_b) < 5e-2
    assert _rel_err(out_big["logvar"], ref_lv_b) < 5e-2
    assert _rel_err(out_big["recon_feat"], ref_rec_b) < 1e-1

    print("KERNEL_OK")
</pallas_src>

<mosaic_0001>
module attributes {stable_mosaic.version = 11 : i64} {
  func.func @_invae_fused_kernel(%arg0: memref<128x128xbf16, #tpu.memory_space<vmem>>, %arg1: memref<128x128xbf16, #tpu.memory_space<vmem>>, %arg2: memref<128x128xf32, #tpu.memory_space<vmem>>, %arg3: memref<128x128xbf16, #tpu.memory_space<vmem>>, %arg4: memref<1x128xf32, #tpu.memory_space<vmem>>, %arg5: memref<128x256xbf16, #tpu.memory_space<vmem>>, %arg6: memref<1x256xf32, #tpu.memory_space<vmem>>, %arg7: memref<128x128xf32, #tpu.memory_space<vmem>>, %arg8: memref<1x128xf32, #tpu.memory_space<vmem>>, %arg9: memref<128x128xf32, #tpu.memory_space<vmem>>, %arg10: memref<1x128xf32, #tpu.memory_space<vmem>>, %arg11: memref<128x128xf32, #tpu.memory_space<vmem>>, %arg12: memref<128x128xf32, #tpu.memory_space<vmem>>, %arg13: memref<128x128xf32, #tpu.memory_space<vmem>>) attributes {dimension_semantics = [], scalar_prefetch = 0 : i64, scratch_operands = 0 : i64, tpu.core_type = #tpu.core_type<tc>} {
    %c0 = arith.constant 0 : index
    %c0_0 = arith.constant 0 : index
    %0 = vector.load %arg1[%c0, %c0_0] : memref<128x128xbf16, #tpu.memory_space<vmem>>, vector<128x128xbf16>
    %c0_1 = arith.constant 0 : index
    %c0_2 = arith.constant 0 : index
    %1 = vector.load %arg2[%c0_1, %c0_2] : memref<128x128xf32, #tpu.memory_space<vmem>>, vector<128x128xf32>
    %c0_3 = arith.constant 0 : index
    %c0_4 = arith.constant 0 : index
    %2 = vector.load %arg0[%c0_3, %c0_4] : memref<128x128xbf16, #tpu.memory_space<vmem>>, vector<128x128xbf16>
    %c0_5 = arith.constant 0 : index
    %c0_6 = arith.constant 0 : index
    %3 = vector.load %arg3[%c0_5, %c0_6] : memref<128x128xbf16, #tpu.memory_space<vmem>>, vector<128x128xbf16>
    %cst = arith.constant dense<0.000000e+00> : vector<128x128xf32>
    %4 = tpu.matmul %2, %3, %cst {dimension_numbers = #tpu.dot_dimension_numbers<[1], [0], [0], [1], [0, 0, 1, 1], [], []>} : vector<128x128xbf16>, vector<128x128xbf16>, vector<128x128xf32> -> vector<128x128xf32>
    %5 = arith.truncf %4 : vector<128x128xf32> to vector<128x128xbf16>
    %cst_7 = arith.constant dense<0.000000e+00> : vector<128x128xf32>
    %6 = tpu.matmul %0, %5, %cst_7 {dimension_numbers = #tpu.dot_dimension_numbers<[1], [0], [0], [1], [0, 0, 1, 1], [], []>} : vector<128x128xbf16>, vector<128x128xbf16>, vector<128x128xf32> -> vector<128x128xf32>
    %c0_8 = arith.constant 0 : index
    %c0_9 = arith.constant 0 : index
    %7 = vector.load %arg4[%c0_8, %c0_9] : memref<1x128xf32, #tpu.memory_space<vmem>>, vector<1x128xf32>
    %8 = vector.broadcast %7 : vector<1x128xf32> to vector<128x128xf32>
    %9 = arith.addf %6, %8 : vector<128x128xf32>
    %cst_10 = arith.constant 0.000000e+00 : f32
    %10 = vector.broadcast %cst_10 : f32 to vector<128x128xf32>
    %11 = arith.maximumf %9, %10 : vector<128x128xf32>
    %12 = arith.truncf %11 : vector<128x128xf32> to vector<128x128xbf16>
    %c0_11 = arith.constant 0 : index
    %c0_12 = arith.constant 0 : index
    %13 = vector.load %arg5[%c0_11, %c0_12] : memref<128x256xbf16, #tpu.memory_space<vmem>>, vector<128x256xbf16>
    %cst_13 = arith.constant dense<0.000000e+00> : vector<128x256xf32>
    %14 = tpu.matmul %12, %13, %cst_13 {dimension_numbers = #tpu.dot_dimension_numbers<[1], [0], [0], [1], [0, 0, 1, 1], [], []>} : vector<128x128xbf16>, vector<128x256xbf16>, vector<128x256xf32> -> vector<128x256xf32>
    %15 = arith.truncf %14 : vector<128x256xf32> to vector<128x256xbf16>
    %cst_14 = arith.constant dense<0.000000e+00> : vector<128x256xf32>
    %16 = tpu.matmul %0, %15, %cst_14 {dimension_numbers = #tpu.dot_dimension_numbers<[1], [0], [0], [1], [0, 0, 1, 1], [], []>} : vector<128x128xbf16>, vector<128x256xbf16>, vector<128x256xf32> -> vector<128x256xf32>
    %c0_15 = arith.constant 0 : index
    %c0_16 = arith.constant 0 : index
    %17 = vector.load %arg6[%c0_15, %c0_16] : memref<1x256xf32, #tpu.memory_space<vmem>>, vector<1x256xf32>
    %18 = vector.broadcast %17 : vector<1x256xf32> to vector<128x256xf32>
    %19 = arith.addf %16, %18 : vector<128x256xf32>
    %20 = vector.extract_strided_slice %19 {offsets = [0, 0], sizes = [128, 128], strides = [1, 1]} : vector<128x256xf32> to vector<128x128xf32>
    %21 = vector.extract_strided_slice %19 {offsets = [0, 128], sizes = [128, 128], strides = [1, 1]} : vector<128x256xf32> to vector<128x128xf32>
    %c0_17 = arith.constant 0 : index
    %c0_18 = arith.constant 0 : index
    %22 = vector.load %arg7[%c0_17, %c0_18] : memref<128x128xf32, #tpu.memory_space<vmem>>, vector<128x128xf32>
    %cst_19 = arith.constant dense<0.000000e+00> : vector<128x128xf32>
    %23 = tpu.matmul %20, %22, %cst_19 {dimension_numbers = #tpu.dot_dimension_numbers<[1], [0], [0], [1], [0, 0, 1, 1], [], []>} : vector<128x128xf32>, vector<128x128xf32>, vector<128x128xf32> -> vector<128x128xf32>
    %cst_20 = arith.constant dense<0.000000e+00> : vector<128x128xf32>
    %24 = tpu.matmul %1, %23, %cst_20 {dimension_numbers = #tpu.dot_dimension_numbers<[1], [0], [0], [1], [0, 0, 1, 1], [], []>} : vector<128x128xf32>, vector<128x128xf32>, vector<128x128xf32> -> vector<128x128xf32>
    %c0_21 = arith.constant 0 : index
    %c0_22 = arith.constant 0 : index
    %25 = vector.load %arg8[%c0_21, %c0_22] : memref<1x128xf32, #tpu.memory_space<vmem>>, vector<1x128xf32>
    %26 = vector.broadcast %25 : vector<1x128xf32> to vector<128x128xf32>
    %27 = arith.addf %24, %26 : vector<128x128xf32>
    %cst_23 = arith.constant 0.000000e+00 : f32
    %28 = vector.broadcast %cst_23 : f32 to vector<128x128xf32>
    %29 = arith.maximumf %27, %28 : vector<128x128xf32>
    %c0_24 = arith.constant 0 : index
    %c0_25 = arith.constant 0 : index
    %30 = vector.load %arg9[%c0_24, %c0_25] : memref<128x128xf32, #tpu.memory_space<vmem>>, vector<128x128xf32>
    %cst_26 = arith.constant dense<0.000000e+00> : vector<128x128xf32>
    %31 = tpu.matmul %29, %30, %cst_26 {dimension_numbers = #tpu.dot_dimension_numbers<[1], [0], [0], [1], [0, 0, 1, 1], [], []>} : vector<128x128xf32>, vector<128x128xf32>, vector<128x128xf32> -> vector<128x128xf32>
    %cst_27 = arith.constant dense<0.000000e+00> : vector<128x128xf32>
    %32 = tpu.matmul %1, %31, %cst_27 {dimension_numbers = #tpu.dot_dimension_numbers<[1], [0], [0], [1], [0, 0, 1, 1], [], []>} : vector<128x128xf32>, vector<128x128xf32>, vector<128x128xf32> -> vector<128x128xf32>
    %c0_28 = arith.constant 0 : index
    %c0_29 = arith.constant 0 : index
    %33 = vector.load %arg10[%c0_28, %c0_29] : memref<1x128xf32, #tpu.memory_space<vmem>>, vector<1x128xf32>
    %34 = vector.broadcast %33 : vector<1x128xf32> to vector<128x128xf32>
    %35 = arith.addf %32, %34 : vector<128x128xf32>
    %36 = arith.negf %35 : vector<128x128xf32>
    %37 = math.exp %36 : vector<128x128xf32>
    %cst_30 = arith.constant 1.000000e+00 : f32
    %38 = vector.broadcast %cst_30 : f32 to vector<128x128xf32>
    %39 = arith.addf %38, %37 : vector<128x128xf32>
    %40 = arith.divf %38, %39 : vector<128x128xf32>
    %c0_31 = arith.constant 0 : index
    %c0_32 = arith.constant 0 : index
    %41 = vector.load %arg11[%c0_31, %c0_32] : memref<128x128xf32, #tpu.memory_space<vmem>>, vector<128x128xf32>
    tpu.vector_store %arg11[%c0_31, %c0_32], %40 {strides = array<i32>} : memref<128x128xf32, #tpu.memory_space<vmem>>, vector<128x128xf32>,
    %c0_33 = arith.constant 0 : index
    %c0_34 = arith.constant 0 : index
    %42 = vector.load %arg12[%c0_33, %c0_34] : memref<128x128xf32, #tpu.memory_space<vmem>>, vector<128x128xf32>
    tpu.vector_store %arg12[%c0_33, %c0_34], %20 {strides = array<i32>} : memref<128x128xf32, #tpu.memory_space<vmem>>, vector<128x128xf32>,
    %c0_35 = arith.constant 0 : index
    %c0_36 = arith.constant 0 : index
    %43 = vector.load %arg13[%c0_35, %c0_36] : memref<128x128xf32, #tpu.memory_space<vmem>>, vector<128x128xf32>
    tpu.vector_store %arg13[%c0_35, %c0_36], %21 {strides = array<i32>} : memref<128x128xf32, #tpu.memory_space<vmem>>, vector<128x128xf32>,
    return
  }
}

</mosaic_0001>

<bundles_post_ra>
// kernel: invae_forward.1
= control target key start
LH: loop header
LB: loop body
LE: loop exit
PB: predicated region body
PF: predicated region fallthrough
CT: control target
= control target key end

     0   :  { %s2394_s3 = inlined_call_operand.vmem [shape: bf16[128,128], index: 3, kind: input, shape index: {}]   ;;  %s2395_s0 = inlined_call_operand.vmem [shape: bf16[128,128], index: 0, kind: input, shape index: {}]   ;;  %s2396_s4 = inlined_call_operand.vmem [shape: f32[1,128], index: 4, kind: input, shape index: {}]   ;;  %s2397_s1 = inlined_call_operand.vmem [shape: bf16[128,128], index: 1, kind: input, shape index: {}]   ;;  %s2398_s5 = inlined_call_operand.vmem [shape: bf16[128,256], index: 5, kind: input, shape index: {}]   ;;  %s2399_s7 = inlined_call_operand.vmem [shape: f32[128,128], index: 7, kind: input, shape index: {}]   ;;  %s2400_s6 = inlined_call_operand.vmem [shape: f32[1,256], index: 6, kind: input, shape index: {}]   ;;  %s2401_s12 = inlined_call_operand.vmem [shape: f32[128,128], index: 12, kind: output, shape index: {1}]   ;;  %s2402_s8 = inlined_call_operand.vmem [shape: f32[1,128], index: 8, kind: input, shape index: {}]   ;;  %s2403_s2 = inlined_call_operand.vmem [shape: f32[128,128], index: 2, kind: input, shape index: {}]   ;;  %s2404_s9 = inlined_call_operand.vmem [shape: f32[128,128], index: 9, kind: input, shape index: {}]   ;;  %s2405_s13 = inlined_call_operand.vmem [shape: f32[128,128], index: 13, kind: output, shape index: {2}]   ;;  %s2406_s10 = inlined_call_operand.vmem [shape: f32[1,128], index: 10, kind: input, shape index: {}]   ;;  %s2407_s11 = inlined_call_operand.vmem [shape: f32[128,128], index: 11, kind: output, shape index: {0}]  }
   0x1   :  { %v1576_v0 = vld [vmem:[%s2394_s3 + $0x38] sm:$0xff]  ;;  %v1575_v1 = vld [vmem:[%s2394_s3 + $0x30] sm:$0xff]  ;;  %v1574_v2 = vld [vmem:[%s2394_s3 + $0x28] sm:$0xff] }
   0x2   :  { %1593 = vmatpush.bf16.msra.mxu2 %v1576_v0  ;;  %201 = vmatpush.bf16.msra.mxu0 %v1576_v0  ;;  %v1573_v3 = vld [vmem:[%s2394_s3 + $0x20] sm:$0xff]  ;;  %v1572_v4 = vld [vmem:[%s2394_s3 + $0x18] sm:$0xff]  ;;  %v1571_v5 = vld [vmem:[%s2394_s3 + $0x10] sm:$0xff] }
   0x3   :  { %v1570_v6 = vld [vmem:[%s2394_s3 + $0x8] sm:$0xff]  ;;  %v1569_v7 = vld [vmem:[%s2394_s3] sm:$0xff]  ;;  %v1567_v12 = vld [vmem:[%s2395_s0 + $0x30] sm:$0xff] }
   0x4   :  { %v1565_v8 = vld [vmem:[%s2395_s0 + $0x20] sm:$0xff]  ;;  %v1566_v10 = vld [vmem:[%s2395_s0 + $0x28] sm:$0xff]  ;;  %v1563_v13 = vld [vmem:[%s2395_s0 + $0x10] sm:$0xff] }
   0x5   :  { %v1561_v9 = vld [vmem:[%s2395_s0] sm:$0xff]  ;;  %v1562_v11 = vld [vmem:[%s2395_s0 + $0x8] sm:$0xff]  ;;  %v1568_v14 = vld [vmem:[%s2395_s0 + $0x38] sm:$0xff] }
   0x6   :  { %1594 = vmatpush.bf16.msra.mxu2 %v1575_v1  ;;  %202 = vmatpush.bf16.msra.mxu0 %v1575_v1  ;;  %v1564_v15 = vld [vmem:[%s2395_s0 + $0x18] sm:$0xff]  ;;  %v1797_v40 = vld [vmem:[%s2397_s1] sm:$0xff]  ;;  %v1803_v41 = vld [vmem:[%s2397_s1 + $0x8] sm:$0xff] }
   0x7   :  { %v1809_v42 = vld [vmem:[%s2397_s1 + $0x20] sm:$0xff]  ;;  %v1815_v43 = vld [vmem:[%s2397_s1 + $0x10] sm:$0xff]  ;;  %v1820_v44 = vld [vmem:[%s2397_s1 + $0x28] sm:$0xff] }
   0x8   :  { %v1531_v45 = vld [vmem:[%s2398_s5 + $0x70] sm:$0xf]  ;;  %v1592_v46 = vld [vmem:[%s2398_s5 + $0x74] sm:$0xf0]  ;;  %v1591_v47 = vld [vmem:[%s2398_s5 + $0x74] sm:$0xf] }
   0x9   :  { %v1532_v48 = vor.u32 %v1592_v46, %v1531_v45  ;;  %v1533_v49 = vld [vmem:[%s2398_s5 + $0x78] sm:$0xf0]  ;;  %v1523_v50 = vld [vmem:[%s2398_s5 + $0x60] sm:$0xf]  ;;  %v1590_v51 = vld [vmem:[%s2398_s5 + $0x64] sm:$0xf0] }
   0xa   :  { %1595 = vmatpush.bf16.msra.mxu2 %v1574_v2  ;;  %203 = vmatpush.bf16.msra.mxu0 %v1574_v2  ;;  %v1536_v52 = vor.u32 %v1591_v47, %v1533_v49  ;;  %v1589_v53 = vld [vmem:[%s2398_s5 + $0x64] sm:$0xf]  ;;  %v1525_v54 = vld [vmem:[%s2398_s5 + $0x68] sm:$0xf0]  ;;  %v1524_v55 = vor.u32 %v1590_v51, %v1523_v50  ;;  %v1515_v57 = vld [vmem:[%s2398_s5 + $0x50] sm:$0xf] }
   0xb   :  { %v1528_v56 = vor.u32 %v1589_v53, %v1525_v54  ;;  %v1588_v58 = vld [vmem:[%s2398_s5 + $0x54] sm:$0xf0]  ;;  %v1587_v59 = vld [vmem:[%s2398_s5 + $0x54] sm:$0xf]  ;;  %v1517_v60 = vld [vmem:[%s2398_s5 + $0x58] sm:$0xf0] }
   0xc   :  { %v1516_v61 = vor.u32 %v1588_v58, %v1515_v57  ;;  %v1520_v62 = vor.u32 %v1587_v59, %v1517_v60  ;;  %v1507_v63 = vld [vmem:[%s2398_s5 + $0x40] sm:$0xf]  ;;  %v1586_v0 = vld [vmem:[%s2398_s5 + $0x44] sm:$0xf0]  ;;  %v1869_v1 = vld [vmem:[%s2397_s1 + $0x18] sm:$0xff] }
   0xd   :  { %v1585_v2 = vld [vmem:[%s2398_s5 + $0x44] sm:$0xf] }
   0xe   :  { %1596 = vmatpush.bf16.msra.mxu2 %v1573_v3  ;;  %204 = vmatpush.bf16.msra.mxu0 %v1573_v3  ;;  %v1509_v3 = vld [vmem:[%s2398_s5 + $0x48] sm:$0xf0] }
  0x12   :  { %1597 = vmatpush.bf16.msra.mxu2 %v1572_v4  ;;  %205 = vmatpush.bf16.msra.mxu0 %v1572_v4  ;;  %v1508_v4 = vor.u32 %v1586_v0, %v1507_v63 }
  0x16   :  { %1598 = vmatpush.bf16.msra.mxu2 %v1571_v5  ;;  %206 = vmatpush.bf16.msra.mxu0 %v1571_v5  ;;  %v1880_v5 = vld [vmem:[%s2397_s1 + $0x30] sm:$0xff] }
  0x1a   :  { %1599 = vmatpush.bf16.msra.mxu2 %v1570_v6  ;;  %207 = vmatpush.bf16.msra.mxu0 %v1570_v6  ;;  %v1512_v6 = vor.u32 %v1585_v2, %v1509_v3 }
  0x1e   :  { %1600 = vmatpush.bf16.msra.mxu2 %v1569_v7  ;;  %208 = vmatpush.bf16.msra.mxu0 %v1569_v7  ;;  %v1887_v7 = vld [vmem:[%s2397_s1 + $0x38] sm:$0xff] }
  0x21   :  { %229 = vmatmul.bf16.vlgmr.msra.gmra.mxu2 %v1565_v8  ;;  %209 = vmatmul.bf16.vlgmr.msra.gmra.mxu0 %v1561_v9  ;;  %v1499_v8 = vld [vmem:[%s2398_s5 + $0x30] sm:$0xf]  ;;  %v1584_v9 = vld [vmem:[%s2398_s5 + $0x34] sm:$0xf0] }
  0x22   :  { %479 = vmatpush.bf16.msrb.mxu2 %v1532_v48 }
  0x26   :  { %480 = vmatpush.bf16.msrb.mxu2 %v1524_v55 }
  0x2a   :  { %481 = vmatpush.bf16.msrb.mxu2 %v1516_v61 }
  0x2e   :  { %482 = vmatpush.bf16.msrb.mxu2 %v1508_v4 }
  0x31   :  { %234 = vmatmul.bf16.gmra.mxu2 %v1566_v10  ;;  %214 = vmatmul.bf16.gmra.mxu0 %v1562_v11  ;;  %v1583_v10 = vld [vmem:[%s2398_s5 + $0x34] sm:$0xf]  ;;  %v1500_v11 = vor.u32 %v1584_v9, %v1499_v8 }
  0x33   :  { %483 = vmatpush.bf16.msrb.mxu2 %v1500_v11 }
  0x41   :  { %239 = vmatmul.bf16.gmra.mxu2 %v1567_v12  ;;  %219 = vmatmul.bf16.gmra.mxu0 %v1563_v13  ;;  %v1501_v12 = vld [vmem:[%s2398_s5 + $0x38] sm:$0xf0] }
  0x42   :  { %v1504_v13 = vor.u32 %v1583_v10, %v1501_v12 }
  0x51   :  { %244 = vmatmul.bf16.gmra.mxu2 %v1568_v14  ;;  %224 = vmatmul.bf16.gmra.mxu0 %v1564_v15  ;;  %v1491_v14 = vld [vmem:[%s2398_s5 + $0x20] sm:$0xf]  ;;  %v1582_v15 = vld [vmem:[%s2398_s5 + $0x24] sm:$0xf0] }
  0x9e   :  { %v210_v17 = vpop.f32.mrf.mxu0 }
  0xa4   :  { %v230_v16 = vpop.f32.mrf.mxu2 }
  0xa6   :  { %v212_v19 = vpop.f32.mrf.mxu0 }
  0xa7   :  { %v250_v39 = vpack.c.bf16 %v212_v19, %v210_v17  ;;  %v1492_v17 = vor.u32 %v1582_v15, %v1491_v14 }
  0xa9   :  { %484 = vmatpush.bf16.msrb.mxu2 %v1492_v17 }
  0xac   :  { %v232_v18 = vpop.f32.mrf.mxu2 }
  0xad   :  { %v254_v34 = vpack.c.bf16 %v232_v18, %v230_v16  ;;  %v1581_v16 = vld [vmem:[%s2398_s5 + $0x24] sm:$0xf]  ;;  %v1493_v18 = vld [vmem:[%s2398_s5 + $0x28] sm:$0xf0] }
  0xae   :  { %v215_v21 = vpop.f32.mrf.mxu0  ;;  %v1496_v19 = vor.u32 %v1581_v16, %v1493_v18 }
  0xb4   :  { %v235_v20 = vpop.f32.mrf.mxu2 }
  0xb6   :  { %v217_v23 = vpop.f32.mrf.mxu0 }
  0xb7   :  { %v251_v38 = vpack.c.bf16 %v217_v23, %v215_v21  ;;  %v1580_v21 = vld [vmem:[%s2398_s5 + $0x14] sm:$0xf0] }
  0xbc   :  { %v237_v22 = vpop.f32.mrf.mxu2 }
  0xbd   :  { %v255_v33 = vpack.c.bf16 %v237_v22, %v235_v20  ;;  %v1483_v20 = vld [vmem:[%s2398_s5 + $0x10] sm:$0xf]  ;;  %v1579_v22 = vld [vmem:[%s2398_s5 + $0x14] sm:$0xf] }
  0xbe   :  { %v220_v25 = vpop.f32.mrf.mxu0  ;;  %v1484_v23 = vor.u32 %v1580_v21, %v1483_v20 }
  0xc0   :  { %485 = vmatpush.bf16.msrb.mxu2 %v1484_v23 }
  0xc4   :  { %v240_v24 = vpop.f32.mrf.mxu2 }
  0xc6   :  { %v222_v28 = vpop.f32.mrf.mxu0 }
  0xc7   :  { %v252_v37 = vpack.c.bf16 %v222_v28, %v220_v25  ;;  %v1577_v28 = vld [vmem:[%s2398_s5 + $0x4] sm:$0xf] }
  0xcc   :  { %v242_v26 = vpop.f32.mrf.mxu2 }
  0xcd   :  { %v256_v32 = vpack.c.bf16 %v242_v26, %v240_v24  ;;  %v1485_v24 = vld [vmem:[%s2398_s5 + $0x18] sm:$0xf0]  ;;  %v1475_v26 = vld [vmem:[%s2398_s5] sm:$0xf] }
  0xce   :  { %v225_v31 = vpop.f32.mrf.mxu0  ;;  %v1488_v25 = vor.u32 %v1579_v22, %v1485_v24 }
  0xd4   :  { %v245_v27 = vpop.f32.mrf.mxu2 }
  0xd6   :  { %v227_v35 = vpop.f32.mrf.mxu0 }
  0xd7   :  { %v253_v36 = vpack.c.bf16 %v227_v35, %v225_v31 }
  0xdc   :  { %v247_v29 = vpop.f32.mrf.mxu2 }
  0xdd   :  { %v257_v30 = vpack.c.bf16 %v247_v29, %v245_v27  ;;  %v1578_v27 = vld [vmem:[%s2398_s5 + $0x4] sm:$0xf0] }
  0xde   :  { %v1476_v29 = vor.u32 %v1578_v27, %v1475_v26 }
  0xdf   :  { %310 = vmatpush.bf16.msra.mxu1 %v257_v30  ;;  %1601 = vmatpush.bf16.msra.mxu3 %v257_v30  ;;  %v1477_v30 = vld [vmem:[%s2398_s5 + $0x8] sm:$0xf0] }
  0xe0   :  { %v1480_v31 = vor.u32 %v1577_v28, %v1477_v30  ;;  %486 = vmatpush.bf16.msrb.mxu2 %v1476_v29 }
  0xe3   :  { %311 = vmatpush.bf16.msra.mxu1 %v256_v32  ;;  %1602 = vmatpush.bf16.msra.mxu3 %v256_v32 }
  0xe7   :  { %312 = vmatpush.bf16.msra.mxu1 %v255_v33  ;;  %1603 = vmatpush.bf16.msra.mxu3 %v255_v33  ;;  %v1941_v33 = vld [vmem:[%s2396_s4] ss:$0 sm:$0xff] }
  0xeb   :  { %313 = vmatpush.bf16.msra.mxu1 %v254_v34  ;;  %1604 = vmatpush.bf16.msra.mxu3 %v254_v34 }
  0xef   :  { %314 = vmatpush.bf16.msra.mxu1 %v253_v36  ;;  %1605 = vmatpush.bf16.msra.mxu3 %v253_v36 }
  0xf3   :  { %315 = vmatpush.bf16.msra.mxu1 %v252_v37  ;;  %1606 = vmatpush.bf16.msra.mxu3 %v252_v37 }
  0xf7   :  { %316 = vmatpush.bf16.msra.mxu1 %v251_v38  ;;  %1607 = vmatpush.bf16.msra.mxu3 %v251_v38 }
  0xfb   :  { %317 = vmatpush.bf16.msra.mxu1 %v250_v39  ;;  %1608 = vmatpush.bf16.msra.mxu3 %v250_v39 }
  0xfe   :  { %318 = vmatmul.bf16.vlgmr.msra.gmra.mxu1 %v1797_v40  ;;  %338 = vmatmul.bf16.vlgmr.msra.gmra.mxu3 %v1809_v42 }
  0xff   :  { %528 = vmatpush.bf16.msrb.mxu3 %v1536_v52 }
 0x103   :  { %529 = vmatpush.bf16.msrb.mxu3 %v1528_v56 }
 0x107   :  { %530 = vmatpush.bf16.msrb.mxu3 %v1520_v62 }
 0x10b   :  { %531 = vmatpush.bf16.msrb.mxu3 %v1512_v6 }
 0x10e   :  { %323 = vmatmul.bf16.gmra.mxu1 %v1803_v41  ;;  %343 = vmatmul.bf16.gmra.mxu3 %v1820_v44 }
 0x10f   :  { %532 = vmatpush.bf16.msrb.mxu3 %v1504_v13 }
 0x113   :  { %533 = vmatpush.bf16.msrb.mxu3 %v1496_v19 }
 0x117   :  { %534 = vmatpush.bf16.msrb.mxu3 %v1488_v25 }
 0x11b   :  { %535 = vmatpush.bf16.msrb.mxu3 %v1480_v31 }
 0x11e   :  { %328 = vmatmul.bf16.gmra.mxu1 %v1815_v43  ;;  %348 = vmatmul.bf16.gmra.mxu3 %v1880_v5 }
 0x12e   :  { %333 = vmatmul.bf16.gmra.mxu1 %v1869_v1  ;;  %353 = vmatmul.bf16.gmra.mxu3 %v1887_v7 }
 0x17b   :  { %v319_v32 = vpop.f32.mrf.mxu1 }
 0x17c   :  { %v320_v34 = vadd.f32 %v1941_v33, %v319_v32 }
 0x17e   :  { %v359_v37 = vmax.f32 %v320_v34, 0.0 }
 0x181   :  { %v339_v58 = vpop.f32.mrf.mxu3 }
 0x182   :  { %v340_v8 = vadd.f32 %v1941_v33, %v339_v58 }
 0x183   :  { %v321_v35 = vpop.f32.mrf.mxu1 }
 0x184   :  { %v322_v36 = vadd.f32 %v1941_v33, %v321_v35  ;;  %v367_v10 = vmax.f32 %v340_v8, 0.0 }
 0x186   :  { %v360_v38 = vmax.f32 %v322_v36, 0.0 }
 0x188   :  { %v375_v39 = vpack.c.bf16 %v360_v38, %v359_v37 }
 0x189   :  { %v341_v61 = vpop.f32.mrf.mxu3 }
 0x18a   :  { %487 = vmatmul.bf16.vlgmr.msrb.gmra.mxu2 %v375_v39  ;;  %536 = vmatmul.bf16.vlgmr.msrb.gmra.mxu3 %v375_v39  ;;  %v342_v9 = vadd.f32 %v1941_v33, %v341_v61 }
 0x18b   :  { %v324_v45 = vpop.f32.mrf.mxu1 }
 0x18c   :  { %v325_v46 = vadd.f32 %v1941_v33, %v324_v45  ;;  %v368_v11 = vmax.f32 %v342_v9, 0.0 }
 0x18e   :  { %v361_v49 = vmax.f32 %v325_v46, 0.0  ;;  %v379_v13 = vpack.c.bf16 %v368_v11, %v367_v10 }
 0x191   :  { %v344_v6 = vpop.f32.mrf.mxu3 }
 0x192   :  { %v345_v15 = vadd.f32 %v1941_v33, %v344_v6 }
 0x193   :  { %v326_v47 = vpop.f32.mrf.mxu1 }
 0x194   :  { %v327_v48 = vadd.f32 %v1941_v33, %v326_v47  ;;  %v369_v17 = vmax.f32 %v345_v15, 0.0 }
 0x196   :  { %v362_v50 = vmax.f32 %v327_v48, 0.0 }
 0x198   :  { %v376_v51 = vpack.c.bf16 %v362_v50, %v361_v49 }
 0x199   :  { %v346_v12 = vpop.f32.mrf.mxu3 }
 0x19a   :  { %492 = vmatmul.bf16.gmra.mxu2 %v376_v51  ;;  %541 = vmatmul.bf16.gmra.mxu3 %v376_v51  ;;  %v347_v16 = vadd.f32 %v1941_v33, %v346_v12 }
 0x19b   :  { %v329_v52 = vpop.f32.mrf.mxu1 }
 0x19c   :  { %v330_v53 = vadd.f32 %v1941_v33, %v329_v52  ;;  %v370_v18 = vmax.f32 %v347_v16, 0.0 }
 0x19e   :  { %v363_v56 = vmax.f32 %v330_v53, 0.0  ;;  %v380_v19 = vpack.c.bf16 %v370_v18, %v369_v17 }
 0x1a1   :  { %v349_v14 = vpop.f32.mrf.mxu3 }
 0x1a2   :  { %v350_v21 = vadd.f32 %v1941_v33, %v349_v14 }
 0x1a3   :  { %v331_v54 = vpop.f32.mrf.mxu1 }
 0x1a4   :  { %v332_v55 = vadd.f32 %v1941_v33, %v331_v54  ;;  %v371_v24 = vmax.f32 %v350_v21, 0.0 }
 0x1a6   :  { %v364_v57 = vmax.f32 %v332_v55, 0.0 }
 0x1a8   :  { %v377_v59 = vpack.c.bf16 %v364_v57, %v363_v56 }
 0x1a9   :  { %v351_v20 = vpop.f32.mrf.mxu3 }
 0x1aa   :  { %497 = vmatmul.bf16.gmra.mxu2 %v377_v59  ;;  %546 = vmatmul.bf16.gmra.mxu3 %v377_v59  ;;  %v352_v22 = vadd.f32 %v1941_v33, %v351_v20 }
 0x1ab   :  { %v334_v60 = vpop.f32.mrf.mxu1 }
 0x1ac   :  { %v335_v62 = vadd.f32 %v1941_v33, %v334_v60  ;;  %v372_v25 = vmax.f32 %v352_v22, 0.0 }
 0x1ae   :  { %v365_v2 = vmax.f32 %v335_v62, 0.0  ;;  %v381_v26 = vpack.c.bf16 %v372_v25, %v371_v24  ;;  %v712_v25 = vld [vmem:[%s2399_s7 + $0x78] sm:$0xff] }
 0x1af   :  { %713 = vmatpush.msra.mxu2 %v712_v25 }
 0x1b1   :  { %v354_v23 = vpop.f32.mrf.mxu3 }
 0x1b2   :  { %v355_v28 = vadd.f32 %v1941_v33, %v354_v23 }
 0x1b3   :  { %v336_v63 = vpop.f32.mrf.mxu1 }
 0x1b4   :  { %v337_v0 = vadd.f32 %v1941_v33, %v336_v63  ;;  %v373_v30 = vmax.f32 %v355_v28, 0.0  ;;  %v704_v28 = vld [vmem:[%s2399_s7 + $0x38] sm:$0xff] }
 0x1b6   :  { %v366_v3 = vmax.f32 %v337_v0, 0.0 }
 0x1b8   :  { %v378_v4 = vpack.c.bf16 %v366_v3, %v365_v2 }
 0x1b9   :  { %v356_v27 = vpop.f32.mrf.mxu3 }
 0x1ba   :  { %502 = vmatmul.bf16.gmra.mxu2 %v378_v4  ;;  %551 = vmatmul.bf16.gmra.mxu3 %v378_v4  ;;  %v357_v29 = vadd.f32 %v1941_v33, %v356_v27  ;;  %v705_v27 = vld [vmem:[%s2399_s7 + $0x40] sm:$0xff] }
 0x1bc   :  { %v374_v31 = vmax.f32 %v357_v29, 0.0  ;;  %v703_v29 = vld [vmem:[%s2399_s7 + $0x30] sm:$0xff] }
 0x1be   :  { %v382_v32 = vpack.c.bf16 %v374_v31, %v373_v30  ;;  %v702_v30 = vld [vmem:[%s2399_s7 + $0x28] sm:$0xff]  ;;  %v701_v31 = vld [vmem:[%s2399_s7 + $0x20] sm:$0xff] }
 0x1ca   :  { %507 = vmatmul.bf16.gmra.mxu2 %v379_v13  ;;  %556 = vmatmul.bf16.gmra.mxu3 %v379_v13 }
 0x1da   :  { %512 = vmatmul.bf16.gmra.mxu2 %v380_v19  ;;  %561 = vmatmul.bf16.gmra.mxu3 %v380_v19 }
 0x1ea   :  { %517 = vmatmul.bf16.gmra.mxu2 %v381_v26  ;;  %566 = vmatmul.bf16.gmra.mxu3 %v381_v26  ;;  %v706_v26 = vld [vmem:[%s2399_s7 + $0x48] sm:$0xff] }
 0x1fa   :  { %522 = vmatmul.bf16.gmra.mxu2 %v382_v32  ;;  %571 = vmatmul.bf16.gmra.mxu3 %v382_v32  ;;  %v700_v32 = vld [vmem:[%s2399_s7 + $0x18] sm:$0xff] }
 0x20d   :  { %v488_v34 = vpop.f32.mrf.mxu2  ;;  %v537_v35 = vpop.f32.mrf.mxu3 }
 0x215   :  { %v490_v36 = vpop.f32.mrf.mxu2  ;;  %v539_v37 = vpop.f32.mrf.mxu3 }
 0x216   :  { %v577_v23 = vpack.c.bf16 %v490_v36, %v488_v34  ;;  %v578_v24 = vpack.c.bf16 %v539_v37, %v537_v35  ;;  %v698_v34 = vld [vmem:[%s2399_s7 + $0x8] sm:$0xff]  ;;  %v697_v35 = vld [vmem:[%s2399_s7] sm:$0xff] }
 0x217   :  { %v2026_v36 = vld [vmem:[%s2400_s6] sm:$0x3] }
 0x218   :  { %v2029_v37 = vperm.slane %v2026_v36, 0 }
 0x21d   :  { %v493_v38 = vpop.f32.mrf.mxu2  ;;  %v542_v39 = vpop.f32.mrf.mxu3 }
 0x225   :  { %v495_v45 = vpop.f32.mrf.mxu2  ;;  %v544_v46 = vpop.f32.mrf.mxu3 }
 0x226   :  { %v579_v21 = vpack.c.bf16 %v495_v45, %v493_v38  ;;  %v580_v22 = vpack.c.bf16 %v544_v46, %v542_v39 }
 0x22d   :  { %v498_v47 = vpop.f32.mrf.mxu2  ;;  %v547_v48 = vpop.f32.mrf.mxu3 }
 0x235   :  { %v500_v49 = vpop.f32.mrf.mxu2  ;;  %v549_v50 = vpop.f32.mrf.mxu3 }
 0x236   :  { %v581_v19 = vpack.c.bf16 %v500_v49, %v498_v47  ;;  %v582_v20 = vpack.c.bf16 %v549_v50, %v547_v48 }
 0x23d   :  { %v503_v51 = vpop.f32.mrf.mxu2  ;;  %v552_v52 = vpop.f32.mrf.mxu3 }
 0x245   :  { %v505_v33 = vpop.f32.mrf.mxu2  ;;  %v554_v53 = vpop.f32.mrf.mxu3 }
 0x246   :  { %v583_v17 = vpack.c.bf16 %v505_v33, %v503_v51  ;;  %v584_v18 = vpack.c.bf16 %v554_v53, %v552_v52 }
 0x24d   :  { %v508_v54 = vpop.f32.mrf.mxu2  ;;  %v557_v55 = vpop.f32.mrf.mxu3 }
 0x255   :  { %v510_v56 = vpop.f32.mrf.mxu2  ;;  %v559_v57 = vpop.f32.mrf.mxu3 }
 0x256   :  { %v585_v15 = vpack.c.bf16 %v510_v56, %v508_v54  ;;  %v586_v16 = vpack.c.bf16 %v559_v57, %v557_v55 }
 0x25d   :  { %v513_v58 = vpop.f32.mrf.mxu2  ;;  %v562_v59 = vpop.f32.mrf.mxu3 }
 0x265   :  { %v515_v60 = vpop.f32.mrf.mxu2  ;;  %v564_v61 = vpop.f32.mrf.mxu3 }
 0x266   :  { %v587_v13 = vpack.c.bf16 %v515_v60, %v513_v58  ;;  %v588_v14 = vpack.c.bf16 %v564_v61, %v562_v59 }
 0x26d   :  { %v518_v62 = vpop.f32.mrf.mxu2  ;;  %v567_v63 = vpop.f32.mrf.mxu3 }
 0x275   :  { %v520_v0 = vpop.f32.mrf.mxu2  ;;  %v569_v2 = vpop.f32.mrf.mxu3 }
 0x276   :  { %v589_v11 = vpack.c.bf16 %v520_v0, %v518_v62  ;;  %v590_v12 = vpack.c.bf16 %v569_v2, %v567_v63 }
 0x27d   :  { %v523_v3 = vpop.f32.mrf.mxu2  ;;  %v572_v4 = vpop.f32.mrf.mxu3 }
 0x285   :  { %v525_v6 = vpop.f32.mrf.mxu2  ;;  %v574_v8 = vpop.f32.mrf.mxu3 }
 0x286   :  { %v591_v9 = vpack.c.bf16 %v525_v6, %v523_v3  ;;  %v592_v10 = vpack.c.bf16 %v574_v8, %v572_v4 }
 0x288   :  { %599 = vmatpush.bf16.msrb.mxu0 %v591_v9  ;;  %648 = vmatpush.bf16.msrb.mxu1 %v592_v10 }
 0x28c   :  { %600 = vmatpush.bf16.msrb.mxu0 %v589_v11  ;;  %649 = vmatpush.bf16.msrb.mxu1 %v590_v12 }
 0x290   :  { %601 = vmatpush.bf16.msrb.mxu0 %v587_v13  ;;  %650 = vmatpush.bf16.msrb.mxu1 %v588_v14 }
 0x294   :  { %602 = vmatpush.bf16.msrb.mxu0 %v585_v15  ;;  %651 = vmatpush.bf16.msrb.mxu1 %v586_v16 }
 0x298   :  { %603 = vmatpush.bf16.msrb.mxu0 %v583_v17  ;;  %652 = vmatpush.bf16.msrb.mxu1 %v584_v18 }
 0x29c   :  { %604 = vmatpush.bf16.msrb.mxu0 %v581_v19  ;;  %653 = vmatpush.bf16.msrb.mxu1 %v582_v20 }
 0x2a0   :  { %605 = vmatpush.bf16.msrb.mxu0 %v579_v21  ;;  %654 = vmatpush.bf16.msrb.mxu1 %v580_v22 }
 0x2a4   :  { %606 = vmatpush.bf16.msrb.mxu0 %v577_v23  ;;  %655 = vmatpush.bf16.msrb.mxu1 %v578_v24 }
 0x2a7   :  { %607 = vmatmul.bf16.vlgmr.msrb.gmra.mxu0 %v1797_v40  ;;  %656 = vmatmul.bf16.vlgmr.msrb.gmra.mxu1 %v1797_v40  ;;  %v711_v40 = vld [vmem:[%s2399_s7 + $0x70] sm:$0xff] }
 0x2a8   :  { %714 = vmatpush.msra.mxu2 %v711_v40 }
 0x2b7   :  { %612 = vmatmul.bf16.gmra.mxu0 %v1803_v41  ;;  %661 = vmatmul.bf16.gmra.mxu1 %v1803_v41  ;;  %v710_v41 = vld [vmem:[%s2399_s7 + $0x68] sm:$0xff] }
 0x2b8   :  { %715 = vmatpush.msra.mxu2 %v710_v41  ;;  %v2098_v41 = vld [vmem:[%s2403_s2] sm:$0xff] }
 0x2c7   :  { %617 = vmatmul.bf16.gmra.mxu0 %v1815_v43  ;;  %666 = vmatmul.bf16.gmra.mxu1 %v1815_v43  ;;  %v709_v43 = vld [vmem:[%s2399_s7 + $0x60] sm:$0xff] }
 0x2c8   :  { %716 = vmatpush.msra.mxu2 %v709_v43  ;;  %v2104_v43 = vld [vmem:[%s2403_s2 + $0x8] sm:$0xff] }
 0x2d7   :  { %622 = vmatmul.bf16.gmra.mxu0 %v1869_v1  ;;  %671 = vmatmul.bf16.gmra.mxu1 %v1869_v1  ;;  %v708_v1 = vld [vmem:[%s2399_s7 + $0x58] sm:$0xff] }
 0x2d8   :  { %717 = vmatpush.msra.mxu2 %v708_v1  ;;  %v2110_v1 = vld [vmem:[%s2403_s2 + $0x10] sm:$0xff] }
 0x2e7   :  { %627 = vmatmul.bf16.gmra.mxu0 %v1809_v42  ;;  %676 = vmatmul.bf16.gmra.mxu1 %v1809_v42  ;;  %v707_v42 = vld [vmem:[%s2399_s7 + $0x50] sm:$0xff] }
 0x2e8   :  { %718 = vmatpush.msra.mxu2 %v707_v42  ;;  %v2116_v42 = vld [vmem:[%s2403_s2 + $0x18] sm:$0xff] }
 0x2ea   :  { %719 = vmatpush.msra.mxu2 %v706_v26  ;;  %v2122_v26 = vld [vmem:[%s2403_s2 + $0x20] sm:$0xff] }
 0x2ec   :  { %720 = vmatpush.msra.mxu2 %v705_v27  ;;  %v2128_v27 = vld [vmem:[%s2403_s2 + $0x28] sm:$0xff] }
 0x2ee   :  { %721 = vmatpush.msra.mxu2 %v704_v28  ;;  %v2134_v28 = vld [vmem:[%s2403_s2 + $0x30] sm:$0xff] }
 0x2f0   :  { %722 = vmatpush.msra.mxu2 %v703_v29  ;;  %v2140_v29 = vld [vmem:[%s2403_s2 + $0x38] sm:$0xff] }
 0x2f2   :  { %723 = vmatpush.msra.mxu2 %v702_v30  ;;  %v2146_v30 = vld [vmem:[%s2403_s2 + $0x40] sm:$0xff] }
 0x2f4   :  { %724 = vmatpush.msra.mxu2 %v701_v31  ;;  %v2152_v31 = vld [vmem:[%s2403_s2 + $0x48] sm:$0xff] }
 0x2f6   :  { %725 = vmatpush.msra.mxu2 %v700_v32  ;;  %v878_v32 = vld [vmem:[%s2404_s9 + $0x78] sm:$0xff] }
 0x2f7   :  { %632 = vmatmul.bf16.gmra.mxu0 %v1820_v44  ;;  %681 = vmatmul.bf16.gmra.mxu1 %v1820_v44  ;;  %v699_v44 = vld [vmem:[%s2399_s7 + $0x10] sm:$0xff] }
 0x2f8   :  { %726 = vmatpush.msra.mxu2 %v699_v44  ;;  %v877_v44 = vld [vmem:[%s2404_s9 + $0x70] sm:$0xff]  ;;  %879 = vmatpush.msra.mxu0 %v878_v32 }
 0x2fa   :  { %727 = vmatpush.msra.mxu2 %v698_v34  ;;  %v876_v34 = vld [vmem:[%s2404_s9 + $0x68] sm:$0xff]  ;;  %880 = vmatpush.msra.mxu0 %v877_v44 }
 0x2fc   :  { %728 = vmatpush.msra.mxu2 %v697_v35  ;;  %v875_v35 = vld [vmem:[%s2404_s9 + $0x60] sm:$0xff]  ;;  %881 = vmatpush.msra.mxu0 %v876_v34 }
 0x2fe   :  { %882 = vmatpush.msra.mxu0 %v875_v35 }
 0x307   :  { %637 = vmatmul.bf16.gmra.mxu0 %v1880_v5  ;;  %686 = vmatmul.bf16.gmra.mxu1 %v1880_v5 }
 0x317   :  { %642 = vmatmul.bf16.gmra.mxu0 %v1887_v7  ;;  %691 = vmatmul.bf16.gmra.mxu1 %v1887_v7 }
 0x324   :  { %v608_v38 = vpop.f32.mrf.mxu0 }
 0x325   :  { %v609_v39 = vadd.f32 %v608_v38, %v2029_v37  ;;  %v874_v38 = vld [vmem:[%s2404_s9 + $0x58] sm:$0xff] }
 0x326   :  { %883 = vmatpush.msra.mxu0 %v874_v38 }
 0x327   :  { %1333 = vst [vmem:[%s2401_s12] sm:$0xff] %v609_v39  ;;  %729 = vmatmul.f32.vlgmr.msra.gmra.mxu2 %v609_v39  ;;  %v873_v39 = vld [vmem:[%s2404_s9 + $0x50] sm:$0xff] }
 0x328   :  { %884 = vmatpush.msra.mxu0 %v873_v39 }
 0x32c   :  { %v610_v5 = vpop.f32.mrf.mxu0 }
 0x32d   :  { %v611_v45 = vadd.f32 %v610_v5, %v2029_v37  ;;  %v872_v5 = vld [vmem:[%s2404_s9 + $0x48] sm:$0xff] }
 0x32e   :  { %885 = vmatpush.msra.mxu0 %v872_v5 }
 0x32f   :  { %1334 = vst [vmem:[%s2401_s12 + $0x8] sm:$0xff] %v611_v45  ;;  %732 = vmatmul.f32.gmra.mxu2 %v611_v45  ;;  %v871_v45 = vld [vmem:[%s2404_s9 + $0x40] sm:$0xff] }
 0x330   :  { %886 = vmatpush.msra.mxu0 %v871_v45 }
 0x334   :  { %v613_v7 = vpop.f32.mrf.mxu0 }
 0x335   :  { %v614_v46 = vadd.f32 %v613_v7, %v2029_v37  ;;  %v2188_v7 = vld [vmem:[%s2403_s2 + $0x58] sm:$0xff] }
 0x337   :  { %1335 = vst [vmem:[%s2401_s12 + $0x10] sm:$0xff] %v614_v46  ;;  %735 = vmatmul.f32.gmra.mxu2 %v614_v46  ;;  %v870_v46 = vld [vmem:[%s2404_s9 + $0x38] sm:$0xff] }
 0x338   :  { %887 = vmatpush.msra.mxu0 %v870_v46 }
 0x33c   :  { %v615_v47 = vpop.f32.mrf.mxu0 }
 0x33d   :  { %v616_v48 = vadd.f32 %v615_v47, %v2029_v37  ;;  %v869_v47 = vld [vmem:[%s2404_s9 + $0x30] sm:$0xff] }
 0x33e   :  { %888 = vmatpush.msra.mxu0 %v869_v47 }
 0x33f   :  { %1336 = vst [vmem:[%s2401_s12 + $0x18] sm:$0xff] %v616_v48  ;;  %738 = vmatmul.f32.gmra.mxu2 %v616_v48  ;;  %v868_v48 = vld [vmem:[%s2404_s9 + $0x28] sm:$0xff] }
 0x340   :  { %889 = vmatpush.msra.mxu0 %v868_v48 }
 0x344   :  { %v618_v49 = vpop.f32.mrf.mxu0 }
 0x345   :  { %v619_v50 = vadd.f32 %v618_v49, %v2029_v37  ;;  %v867_v49 = vld [vmem:[%s2404_s9 + $0x20] sm:$0xff] }
 0x346   :  { %890 = vmatpush.msra.mxu0 %v867_v49 }
 0x347   :  { %1337 = vst [vmem:[%s2401_s12 + $0x20] sm:$0xff] %v619_v50  ;;  %741 = vmatmul.f32.gmra.mxu2 %v619_v50  ;;  %v2206_v50 = vld [vmem:[%s2403_s2 + $0x60] sm:$0xff] }
 0x34c   :  { %v620_v51 = vpop.f32.mrf.mxu0 }
 0x34d   :  { %v621_v52 = vadd.f32 %v620_v51, %v2029_v37  ;;  %v866_v51 = vld [vmem:[%s2404_s9 + $0x18] sm:$0xff] }
 0x34e   :  { %891 = vmatpush.msra.mxu0 %v866_v51 }
 0x34f   :  { %1338 = vst [vmem:[%s2401_s12 + $0x28] sm:$0xff] %v621_v52  ;;  %744 = vmatmul.f32.gmra.mxu2 %v621_v52  ;;  %v865_v52 = vld [vmem:[%s2404_s9 + $0x10] sm:$0xff] }
 0x350   :  { %892 = vmatpush.msra.mxu0 %v865_v52 }
 0x354   :  { %v623_v33 = vpop.f32.mrf.mxu0 }
 0x355   :  { %v624_v53 = vadd.f32 %v623_v33, %v2029_v37  ;;  %v864_v33 = vld [vmem:[%s2404_s9 + $0x8] sm:$0xff] }
 0x356   :  { %893 = vmatpush.msra.mxu0 %v864_v33 }
 0x357   :  { %1339 = vst [vmem:[%s2401_s12 + $0x30] sm:$0xff] %v624_v53  ;;  %747 = vmatmul.f32.gmra.mxu2 %v624_v53  ;;  %v2221_v53 = vld [vmem:[%s2403_s2 + $0x68] sm:$0xff] }
 0x35c   :  { %v625_v54 = vpop.f32.mrf.mxu0 }
 0x35d   :  { %v626_v55 = vadd.f32 %v625_v54, %v2029_v37  ;;  %v863_v54 = vld [vmem:[%s2404_s9] sm:$0xff] }
 0x35e   :  { %894 = vmatpush.msra.mxu0 %v863_v54 }
 0x35f   :  { %1340 = vst [vmem:[%s2401_s12 + $0x38] sm:$0xff] %v626_v55  ;;  %750 = vmatmul.f32.gmra.mxu2 %v626_v55  ;;  %v2230_v55 = vld [vmem:[%s2403_s2 + $0x70] sm:$0xff] }
 0x364   :  { %v628_v56 = vpop.f32.mrf.mxu0 }
 0x365   :  { %v629_v57 = vadd.f32 %v628_v56, %v2029_v37  ;;  %v2236_v56 = vld [vmem:[%s2403_s2 + $0x78] sm:$0xff] }
 0x367   :  { %1341 = vst [vmem:[%s2401_s12 + $0x40] sm:$0xff] %v629_v57  ;;  %753 = vmatmul.f32.gmra.mxu2 %v629_v57  ;;  %v1610_v57 = vld [vmem:[%s2402_s8] ss:$0 sm:$0xff] }
 0x36c   :  { %v630_v58 = vpop.f32.mrf.mxu0 }
 0x36d   :  { %v631_v59 = vadd.f32 %v630_v58, %v2029_v37 }
 0x36f   :  { %1342 = vst [vmem:[%s2401_s12 + $0x48] sm:$0xff] %v631_v59  ;;  %756 = vmatmul.f32.gmra.mxu2 %v631_v59 }
 0x374   :  { %v633_v60 = vpop.f32.mrf.mxu0 }
 0x375   :  { %v634_v61 = vadd.f32 %v633_v60, %v2029_v37 }
 0x377   :  { %1343 = vst [vmem:[%s2401_s12 + $0x50] sm:$0xff] %v634_v61  ;;  %759 = vmatmul.f32.gmra.mxu2 %v634_v61 }
 0x37c   :  { %v635_v62 = vpop.f32.mrf.mxu0 }
 0x37d   :  { %v636_v63 = vadd.f32 %v635_v62, %v2029_v37 }
 0x37f   :  { %1344 = vst [vmem:[%s2401_s12 + $0x58] sm:$0xff] %v636_v63  ;;  %762 = vmatmul.f32.gmra.mxu2 %v636_v63 }
 0x384   :  { %v638_v0 = vpop.f32.mrf.mxu0 }
 0x385   :  { %v639_v2 = vadd.f32 %v638_v0, %v2029_v37 }
 0x387   :  { %1345 = vst [vmem:[%s2401_s12 + $0x60] sm:$0xff] %v639_v2  ;;  %765 = vmatmul.f32.gmra.mxu2 %v639_v2 }
 0x38c   :  { %v640_v3 = vpop.f32.mrf.mxu0 }
 0x38d   :  { %v641_v4 = vadd.f32 %v640_v3, %v2029_v37 }
 0x38f   :  { %1346 = vst [vmem:[%s2401_s12 + $0x68] sm:$0xff] %v641_v4  ;;  %768 = vmatmul.f32.gmra.mxu2 %v641_v4 }
 0x394   :  { %v643_v6 = vpop.f32.mrf.mxu0 }
 0x395   :  { %v644_v8 = vadd.f32 %v643_v6, %v2029_v37 }
 0x397   :  { %1347 = vst [vmem:[%s2401_s12 + $0x70] sm:$0xff] %v644_v8  ;;  %771 = vmatmul.f32.gmra.mxu2 %v644_v8 }
 0x39c   :  { %v645_v9 = vpop.f32.mrf.mxu0 }
 0x39d   :  { %v646_v10 = vadd.f32 %v645_v9, %v2029_v37  ;;  %v2170_v37 = vld [vmem:[%s2403_s2 + $0x50] sm:$0xff] }
 0x39f   :  { %1348 = vst [vmem:[%s2401_s12 + $0x78] sm:$0xff] %v646_v10  ;;  %774 = vmatmul.f32.gmra.mxu2 %v646_v10 }
 0x3aa   :  { %v730_v11 = vpop.f32.mrf.mxu2 }
 0x3b2   :  { %v733_v12 = vpop.f32.mrf.mxu2 }
 0x3ba   :  { %v736_v13 = vpop.f32.mrf.mxu2 }
 0x3c2   :  { %v739_v14 = vpop.f32.mrf.mxu2 }
 0x3ca   :  { %v742_v15 = vpop.f32.mrf.mxu2 }
 0x3d2   :  { %v745_v16 = vpop.f32.mrf.mxu2 }
 0x3da   :  { %v748_v17 = vpop.f32.mrf.mxu2 }
 0x3e2   :  { %v751_v18 = vpop.f32.mrf.mxu2 }
 0x3ea   :  { %v754_v19 = vpop.f32.mrf.mxu2 }
 0x3f2   :  { %v757_v20 = vpop.f32.mrf.mxu2 }
 0x3fa   :  { %v760_v21 = vpop.f32.mrf.mxu2 }
 0x402   :  { %v763_v22 = vpop.f32.mrf.mxu2 }
 0x40a   :  { %v766_v23 = vpop.f32.mrf.mxu2 }
 0x412   :  { %v769_v24 = vpop.f32.mrf.mxu2 }
 0x41a   :  { %v772_v25 = vpop.f32.mrf.mxu2 }
 0x422   :  { %v775_v40 = vpop.f32.mrf.mxu2 }
 0x423   :  { %782 = vmatpush.msra.mxu3 %v775_v40 }
 0x425   :  { %783 = vmatpush.msra.mxu3 %v772_v25 }
 0x427   :  { %784 = vmatpush.msra.mxu3 %v769_v24 }
 0x429   :  { %785 = vmatpush.msra.mxu3 %v766_v23 }
 0x42b   :  { %786 = vmatpush.msra.mxu3 %v763_v22 }
 0x42d   :  { %787 = vmatpush.msra.mxu3 %v760_v21 }
 0x42f   :  { %788 = vmatpush.msra.mxu3 %v757_v20 }
 0x431   :  { %789 = vmatpush.msra.mxu3 %v754_v19 }
 0x433   :  { %790 = vmatpush.msra.mxu3 %v751_v18 }
 0x435   :  { %791 = vmatpush.msra.mxu3 %v748_v17 }
 0x437   :  { %792 = vmatpush.msra.mxu3 %v745_v16 }
 0x439   :  { %793 = vmatpush.msra.mxu3 %v742_v15 }
 0x43b   :  { %794 = vmatpush.msra.mxu3 %v739_v14 }
 0x43d   :  { %795 = vmatpush.msra.mxu3 %v736_v13 }
 0x43f   :  { %796 = vmatpush.msra.mxu3 %v733_v12 }
 0x441   :  { %797 = vmatpush.msra.mxu3 %v730_v11 }
 0x442   :  { %798 = vmatmul.f32.vlgmr.msra.gmra.mxu3 %v2098_v41 }
 0x44a   :  { %801 = vmatmul.f32.gmra.mxu3 %v2104_v43 }
 0x452   :  { %804 = vmatmul.f32.gmra.mxu3 %v2110_v1 }
 0x45a   :  { %807 = vmatmul.f32.gmra.mxu3 %v2116_v42 }
 0x462   :  { %810 = vmatmul.f32.gmra.mxu3 %v2122_v26 }
 0x46a   :  { %813 = vmatmul.f32.gmra.mxu3 %v2128_v27 }
 0x472   :  { %816 = vmatmul.f32.gmra.mxu3 %v2134_v28 }
 0x47a   :  { %819 = vmatmul.f32.gmra.mxu3 %v2140_v29 }
 0x482   :  { %822 = vmatmul.f32.gmra.mxu3 %v2146_v30 }
 0x48a   :  { %825 = vmatmul.f32.gmra.mxu3 %v2152_v31 }
 0x492   :  { %828 = vmatmul.f32.gmra.mxu3 %v2170_v37 }
 0x49a   :  { %831 = vmatmul.f32.gmra.mxu3 %v2188_v7 }
 0x4a2   :  { %834 = vmatmul.f32.gmra.mxu3 %v2206_v50 }
 0x4aa   :  { %837 = vmatmul.f32.gmra.mxu3 %v2221_v53 }
 0x4b2   :  { %840 = vmatmul.f32.gmra.mxu3 %v2230_v55 }
 0x4ba   :  { %843 = vmatmul.f32.gmra.mxu3 %v2236_v56 }
 0x4c5   :  { %v799_v58 = vpop.f32.mrf.mxu3 }
 0x4c6   :  { %v800_v59 = vadd.f32 %v1610_v57, %v799_v58 }
 0x4c8   :  { %v847_v60 = vmax.f32 %v800_v59, 0.0 }
 0x4ca   :  { %895 = vmatmul.f32.vlgmr.msra.gmra.mxu0 %v847_v60 }
 0x4cd   :  { %v802_v61 = vpop.f32.mrf.mxu3 }
 0x4ce   :  { %v803_v62 = vadd.f32 %v1610_v57, %v802_v61 }
 0x4d0   :  { %v848_v63 = vmax.f32 %v803_v62, 0.0 }
 0x4d2   :  { %898 = vmatmul.f32.gmra.mxu0 %v848_v63 }
 0x4d5   :  { %v805_v0 = vpop.f32.mrf.mxu3 }
 0x4d6   :  { %v806_v2 = vadd.f32 %v1610_v57, %v805_v0 }
 0x4d8   :  { %v849_v3 = vmax.f32 %v806_v2, 0.0 }
 0x4da   :  { %901 = vmatmul.f32.gmra.mxu0 %v849_v3 }
 0x4dd   :  { %v808_v4 = vpop.f32.mrf.mxu3 }
 0x4de   :  { %v809_v6 = vadd.f32 %v1610_v57, %v808_v4 }
 0x4e0   :  { %v850_v8 = vmax.f32 %v809_v6, 0.0 }
 0x4e2   :  { %904 = vmatmul.f32.gmra.mxu0 %v850_v8 }
 0x4e5   :  { %v811_v9 = vpop.f32.mrf.mxu3 }
 0x4e6   :  { %v812_v10 = vadd.f32 %v1610_v57, %v811_v9 }
 0x4e8   :  { %v851_v11 = vmax.f32 %v812_v10, 0.0 }
 0x4ea   :  { %907 = vmatmul.f32.gmra.mxu0 %v851_v11 }
 0x4ed   :  { %v814_v12 = vpop.f32.mrf.mxu3 }
 0x4ee   :  { %v815_v13 = vadd.f32 %v1610_v57, %v814_v12 }
 0x4f0   :  { %v852_v14 = vmax.f32 %v815_v13, 0.0  ;;  %v657_v13 = vpop.f32.mrf.mxu1 }
 0x4f2   :  { %910 = vmatmul.f32.gmra.mxu0 %v852_v14 }
 0x4f5   :  { %v817_v15 = vpop.f32.mrf.mxu3 }
 0x4f6   :  { %v818_v16 = vadd.f32 %v1610_v57, %v817_v15 }
 0x4f8   :  { %v853_v17 = vmax.f32 %v818_v16, 0.0  ;;  %v659_v15 = vpop.f32.mrf.mxu1 }
 0x4fa   :  { %913 = vmatmul.f32.gmra.mxu0 %v853_v17 }
 0x4fd   :  { %v820_v18 = vpop.f32.mrf.mxu3 }
 0x4fe   :  { %v821_v19 = vadd.f32 %v1610_v57, %v820_v18 }
 0x500   :  { %v854_v20 = vmax.f32 %v821_v19, 0.0  ;;  %v662_v19 = vpop.f32.mrf.mxu1 }
 0x502   :  { %916 = vmatmul.f32.gmra.mxu0 %v854_v20 }
 0x505   :  { %v823_v21 = vpop.f32.mrf.mxu3 }
 0x506   :  { %v824_v22 = vadd.f32 %v1610_v57, %v823_v21 }
 0x508   :  { %v855_v23 = vmax.f32 %v824_v22, 0.0  ;;  %v664_v20 = vpop.f32.mrf.mxu1 }
 0x50a   :  { %919 = vmatmul.f32.gmra.mxu0 %v855_v23 }
 0x50d   :  { %v826_v24 = vpop.f32.mrf.mxu3 }
 0x50e   :  { %v827_v25 = vadd.f32 %v1610_v57, %v826_v24 }
 0x510   :  { %v856_v40 = vmax.f32 %v827_v25, 0.0  ;;  %v667_v22 = vpop.f32.mrf.mxu1 }
 0x512   :  { %922 = vmatmul.f32.gmra.mxu0 %v856_v40 }
 0x515   :  { %v829_v32 = vpop.f32.mrf.mxu3 }
 0x516   :  { %v830_v44 = vadd.f32 %v1610_v57, %v829_v32 }
 0x518   :  { %v857_v34 = vmax.f32 %v830_v44, 0.0  ;;  %v669_v24 = vpop.f32.mrf.mxu1 }
 0x51a   :  { %925 = vmatmul.f32.gmra.mxu0 %v857_v34 }
 0x51d   :  { %v832_v35 = vpop.f32.mrf.mxu3 }
 0x51e   :  { %v833_v38 = vadd.f32 %v1610_v57, %v832_v35 }
 0x520   :  { %v858_v39 = vmax.f32 %v833_v38, 0.0  ;;  %v672_v40 = vpop.f32.mrf.mxu1 }
 0x522   :  { %928 = vmatmul.f32.gmra.mxu0 %v858_v39 }
 0x525   :  { %v835_v5 = vpop.f32.mrf.mxu3 }
 0x526   :  { %v836_v45 = vadd.f32 %v1610_v57, %v835_v5 }
 0x528   :  { %v859_v46 = vmax.f32 %v836_v45, 0.0  ;;  %v674_v44 = vpop.f32.mrf.mxu1 }
 0x52a   :  { %931 = vmatmul.f32.gmra.mxu0 %v859_v46 }
 0x52d   :  { %v838_v47 = vpop.f32.mrf.mxu3 }
 0x52e   :  { %v839_v48 = vadd.f32 %v1610_v57, %v838_v47 }
 0x530   :  { %v860_v49 = vmax.f32 %v839_v48, 0.0 }
 0x532   :  { %934 = vmatmul.f32.gmra.mxu0 %v860_v49 }
 0x535   :  { %v841_v51 = vpop.f32.mrf.mxu3 }
 0x536   :  { %v842_v52 = vadd.f32 %v1610_v57, %v841_v51 }
 0x538   :  { %v861_v33 = vmax.f32 %v842_v52, 0.0 }
 0x53a   :  { %937 = vmatmul.f32.gmra.mxu0 %v861_v33 }
 0x53d   :  { %v844_v54 = vpop.f32.mrf.mxu3 }
 0x53e   :  { %v845_v58 = vadd.f32 %v1610_v57, %v844_v54  ;;  %v2243_v57 = vperm.slane %v2026_v36, 1 }
 0x540   :  { %v862_v59 = vmax.f32 %v845_v58, 0.0  ;;  %v658_v16 = vadd.f32 %v657_v13, %v2243_v57  ;;  %v660_v17 = vadd.f32 %v659_v15, %v2243_v57  ;;  %v663_v36 = vadd.f32 %v662_v19, %v2243_v57 }
 0x541   :  { %v665_v21 = vadd.f32 %v664_v20, %v2243_v57  ;;  %v668_v23 = vadd.f32 %v667_v22, %v2243_v57  ;;  %v670_v25 = vadd.f32 %v669_v24, %v2243_v57  ;;  %v673_v32 = vadd.f32 %v672_v40, %v2243_v57 }
 0x542   :  { %940 = vmatmul.f32.gmra.mxu0 %v862_v59  ;;  %1349 = vst [vmem:[%s2405_s13] sm:$0xff] %v658_v16  ;;  %v675_v34 = vadd.f32 %v674_v44, %v2243_v57 }
 0x543   :  { %1350 = vst [vmem:[%s2405_s13 + $0x8] sm:$0xff] %v660_v17 }
 0x544   :  { %1351 = vst [vmem:[%s2405_s13 + $0x10] sm:$0xff] %v663_v36 }
 0x545   :  { %1352 = vst [vmem:[%s2405_s13 + $0x18] sm:$0xff] %v665_v21 }
 0x546   :  { %1353 = vst [vmem:[%s2405_s13 + $0x20] sm:$0xff] %v668_v23 }
 0x547   :  { %v896_v60 = vpop.f32.mrf.mxu0  ;;  %1354 = vst [vmem:[%s2405_s13 + $0x28] sm:$0xff] %v670_v25 }
 0x548   :  { %1355 = vst [vmem:[%s2405_s13 + $0x30] sm:$0xff] %v673_v32 }
 0x549   :  { %1356 = vst [vmem:[%s2405_s13 + $0x38] sm:$0xff] %v675_v34 }
 0x54f   :  { %v899_v61 = vpop.f32.mrf.mxu0 }
 0x557   :  { %v902_v62 = vpop.f32.mrf.mxu0 }
 0x55f   :  { %v905_v63 = vpop.f32.mrf.mxu0 }
 0x567   :  { %v908_v0 = vpop.f32.mrf.mxu0 }
 0x56f   :  { %v911_v2 = vpop.f32.mrf.mxu0 }
 0x577   :  { %v914_v3 = vpop.f32.mrf.mxu0 }
 0x57f   :  { %v917_v4 = vpop.f32.mrf.mxu0 }
 0x587   :  { %v920_v6 = vpop.f32.mrf.mxu0 }
 0x58f   :  { %v923_v8 = vpop.f32.mrf.mxu0 }
 0x597   :  { %v926_v9 = vpop.f32.mrf.mxu0 }
 0x59f   :  { %v929_v10 = vpop.f32.mrf.mxu0 }
 0x5a7   :  { %v932_v11 = vpop.f32.mrf.mxu0 }
 0x5af   :  { %v935_v12 = vpop.f32.mrf.mxu0 }
 0x5b7   :  { %v938_v14 = vpop.f32.mrf.mxu0 }
 0x5bf   :  { %v941_v18 = vpop.f32.mrf.mxu0 }
 0x5c0   :  { %948 = vmatpush.msra.mxu1 %v941_v18 }
 0x5c2   :  { %949 = vmatpush.msra.mxu1 %v938_v14 }
 0x5c4   :  { %950 = vmatpush.msra.mxu1 %v935_v12 }
 0x5c6   :  { %951 = vmatpush.msra.mxu1 %v932_v11 }
 0x5c8   :  { %952 = vmatpush.msra.mxu1 %v929_v10 }
 0x5ca   :  { %953 = vmatpush.msra.mxu1 %v926_v9 }
 0x5cc   :  { %954 = vmatpush.msra.mxu1 %v923_v8 }
 0x5ce   :  { %955 = vmatpush.msra.mxu1 %v920_v6 }
 0x5d0   :  { %956 = vmatpush.msra.mxu1 %v917_v4 }
 0x5d2   :  { %957 = vmatpush.msra.mxu1 %v914_v3 }
 0x5d4   :  { %958 = vmatpush.msra.mxu1 %v911_v2 }
 0x5d6   :  { %959 = vmatpush.msra.mxu1 %v908_v0 }
 0x5d8   :  { %960 = vmatpush.msra.mxu1 %v905_v63 }
 0x5da   :  { %961 = vmatpush.msra.mxu1 %v902_v62 }
 0x5dc   :  { %962 = vmatpush.msra.mxu1 %v899_v61 }
 0x5de   :  { %963 = vmatpush.msra.mxu1 %v896_v60 }
 0x5df   :  { %964 = vmatmul.f32.vlgmr.msra.gmra.mxu1 %v2098_v41  ;;  %v677_v41 = vpop.f32.mrf.mxu1 }
 0x5e7   :  { %967 = vmatmul.f32.gmra.mxu1 %v2104_v43  ;;  %v678_v43 = vadd.f32 %v677_v41, %v2243_v57  ;;  %v679_v35 = vpop.f32.mrf.mxu1 }
 0x5e8   :  { %v680_v38 = vadd.f32 %v679_v35, %v2243_v57 }
 0x5e9   :  { %1357 = vst [vmem:[%s2405_s13 + $0x40] sm:$0xff] %v678_v43 }
 0x5ea   :  { %1358 = vst [vmem:[%s2405_s13 + $0x48] sm:$0xff] %v680_v38 }
 0x5ef   :  { %970 = vmatmul.f32.gmra.mxu1 %v2110_v1  ;;  %v682_v1 = vpop.f32.mrf.mxu1 }
 0x5f7   :  { %973 = vmatmul.f32.gmra.mxu1 %v2116_v42  ;;  %v683_v42 = vadd.f32 %v682_v1, %v2243_v57  ;;  %v684_v39 = vpop.f32.mrf.mxu1 }
 0x5f8   :  { %v685_v5 = vadd.f32 %v684_v39, %v2243_v57 }
 0x5f9   :  { %1359 = vst [vmem:[%s2405_s13 + $0x50] sm:$0xff] %v683_v42 }
 0x5fa   :  { %1360 = vst [vmem:[%s2405_s13 + $0x58] sm:$0xff] %v685_v5 }
 0x5ff   :  { %976 = vmatmul.f32.gmra.mxu1 %v2122_v26  ;;  %v687_v26 = vpop.f32.mrf.mxu1 }
 0x607   :  { %979 = vmatmul.f32.gmra.mxu1 %v2128_v27  ;;  %v688_v27 = vadd.f32 %v687_v26, %v2243_v57  ;;  %v689_v45 = vpop.f32.mrf.mxu1 }
 0x608   :  { %v690_v46 = vadd.f32 %v689_v45, %v2243_v57 }
 0x609   :  { %1361 = vst [vmem:[%s2405_s13 + $0x60] sm:$0xff] %v688_v27 }
 0x60a   :  { %1362 = vst [vmem:[%s2405_s13 + $0x68] sm:$0xff] %v690_v46 }
 0x60f   :  { %982 = vmatmul.f32.gmra.mxu1 %v2134_v28  ;;  %v692_v28 = vpop.f32.mrf.mxu1 }
 0x617   :  { %985 = vmatmul.f32.gmra.mxu1 %v2140_v29  ;;  %v693_v29 = vadd.f32 %v692_v28, %v2243_v57  ;;  %v694_v47 = vpop.f32.mrf.mxu1 }
 0x618   :  { %v695_v48 = vadd.f32 %v694_v47, %v2243_v57 }
 0x619   :  { %1363 = vst [vmem:[%s2405_s13 + $0x70] sm:$0xff] %v693_v29 }
 0x61a   :  { %1364 = vst [vmem:[%s2405_s13 + $0x78] sm:$0xff] %v695_v48 }
 0x61f   :  { %988 = vmatmul.f32.gmra.mxu1 %v2146_v30  ;;  %v2328_v30 = vld [vmem:[%s2406_s10] ss:$0 sm:$0xff] }
 0x627   :  { %991 = vmatmul.f32.gmra.mxu1 %v2152_v31 }
 0x62f   :  { %994 = vmatmul.f32.gmra.mxu1 %v2170_v37 }
 0x637   :  { %997 = vmatmul.f32.gmra.mxu1 %v2188_v7 }
 0x63f   :  { %1000 = vmatmul.f32.gmra.mxu1 %v2206_v50 }
 0x647   :  { %1003 = vmatmul.f32.gmra.mxu1 %v2221_v53 }
 0x64f   :  { %1006 = vmatmul.f32.gmra.mxu1 %v2230_v55 }
 0x657   :  { %1009 = vmatmul.f32.gmra.mxu1 %v2236_v56 }
 0x65c   :  { %v965_v31 = vpop.f32.mrf.mxu1 }
 0x65d   :  { %v966_v37 = vadd.f32 %v2328_v30, %v965_v31 }
 0x65f   :  { %v1537_v49 = vmul.f32 -1.442695, %v966_v37 }
 0x661   :  { %1612 = vpow2.f32 %v1537_v49 }
 0x664   :  { %v968_v51 = vpop.f32.mrf.mxu1 }
 0x665   :  { %v969_v7 = vadd.f32 %v2328_v30, %v968_v51 }
 0x667   :  { %v1613_v50 = vpop.eup %1612  ;;  %v1538_v52 = vmul.f32 -1.442695, %v969_v7 }
 0x668   :  { %v1061_v53 = vadd.f32 1.0, %v1613_v50 }
 0x669   :  { %1614 = vpow2.f32 %v1538_v52 }
 0x66a   :  { %1616 = vrcp.f32 %v1061_v53  ;;  %v1088_v62 = vand.u32 2147483648, %v1061_v53  ;;  %v1086_v2 = vand.u32 2147483647, %v1061_v53  ;;  %vm1082_vm1 = vweird.f32 %v1061_v53 }
 0x66c   :  { %v971_v55 = vpop.f32.mrf.mxu1  ;;  %v1089_v10 = vor.u32 1.1754944e-38, %v1088_v62  ;;  %vm1087_vm3 = vcmp.eq.f32.partialorder %v1086_v2, 8.507059e+37 }
 0x66d   :  { %v972_v56 = vadd.f32 %v2328_v30, %v971_v55 }
 0x66f   :  { %v1615_v33 = vpop.eup %1614  ;;  %v1539_v54 = vmul.f32 -1.442695, %v972_v56 }
 0x670   :  { %v1617_v58 = vpop.eup %1616  ;;  %v1062_v59 = vadd.f32 1.0, %v1615_v33 }
 0x671   :  { %v1078_v60 = vmul.f32 %v1617_v58, %v1061_v53  ;;  %1618 = vpow2.f32 %v1539_v54  ;;  %vm1083_vm0 = vweird.f32 %v1617_v58 }
 0x672   :  { %1620 = vrcp.f32 %v1062_v59  ;;  %vm1084_vm2 = vmor %vm1082_vm1, %vm1083_vm0  ;;  %v1103_v15 = vand.u32 2147483648, %v1062_v59  ;;  %v1101_v18 = vand.u32 2147483647, %v1062_v59  ;;  %vm1097_vm5 = vweird.f32 %v1062_v59 }
 0x673   :  { %v1079_v61 = vsub.f32 1.0, %v1078_v60 }
 0x674   :  { %v974_v63 = vpop.f32.mrf.mxu1  ;;  %v1104_v23 = vor.u32 1.1754944e-38, %v1103_v15  ;;  %vm1102_vm7 = vcmp.eq.f32.partialorder %v1101_v18, 8.507059e+37 }
 0x675   :  { %v1080_v0 = vmul.f32 %v1617_v58, %v1079_v61  ;;  %v975_v3 = vadd.f32 %v2328_v30, %v974_v63 }
 0x677   :  { %v1619_v4 = vpop.eup %1618  ;;  %v1081_v6 = vadd.f32 %v1617_v58, %v1080_v0  ;;  %v1540_v8 = vmul.f32 -1.442695, %v975_v3 }
 0x678   :  { %v1621_v9 = vpop.eup %1620  ;;  %v1063_v11 = vadd.f32 1.0, %v1619_v4 }
 0x679   :  { %v1085_v12 = vsel %vm1084_vm2, %v1617_v58, %v1081_v6  ;;  %v1093_v13 = vmul.f32 %v1621_v9, %v1062_v59  ;;  %1622 = vpow2.f32 %v1540_v8  ;;  %vm1098_vm4 = vweird.f32 %v1621_v9 }
 0x67a   :  { %v1090_v14 = vsel %vm1087_vm3, %v1089_v10, %v1085_v12  ;;  %1624 = vrcp.f32 %v1063_v11  ;;  %vm1099_vm6 = vmor %vm1097_vm5, %vm1098_vm4  ;;  %v1118_v34 = vand.u32 2147483648, %v1063_v11  ;;  %v1116_v35 = vand.u32 2147483647, %v1063_v11 }
 0x67b   :  { %1317 = vst [vmem:[%s2407_s11] sm:$0xff] %v1090_v14  ;;  %v1094_v57 = vsub.f32 1.0, %v1093_v13  ;;  %vm1112_vm9 = vweird.f32 %v1063_v11 }
 0x67c   :  { %v977_v16 = vpop.f32.mrf.mxu1  ;;  %v1119_v26 = vor.u32 1.1754944e-38, %v1118_v34  ;;  %vm1117_vm11 = vcmp.eq.f32.partialorder %v1116_v35, 8.507059e+37 }
 0x67d   :  { %v1095_v17 = vmul.f32 %v1621_v9, %v1094_v57  ;;  %v978_v19 = vadd.f32 %v2328_v30, %v977_v16 }
 0x67f   :  { %v1623_v36 = vpop.eup %1622  ;;  %v1096_v20 = vadd.f32 %v1621_v9, %v1095_v17  ;;  %v1541_v21 = vmul.f32 -1.442695, %v978_v19 }
 0x680   :  { %v1625_v22 = vpop.eup %1624  ;;  %v1064_v24 = vadd.f32 1.0, %v1623_v36 }
 0x681   :  { %v1100_v25 = vsel %vm1099_vm6, %v1621_v9, %v1096_v20  ;;  %v1108_v40 = vmul.f32 %v1625_v22, %v1063_v11  ;;  %1626 = vpow2.f32 %v1541_v21  ;;  %vm1113_vm8 = vweird.f32 %v1625_v22 }
 0x682   :  { %v1105_v32 = vsel %vm1102_vm7, %v1104_v23, %v1100_v25  ;;  %1628 = vrcp.f32 %v1064_v24  ;;  %vm1114_vm10 = vmor %vm1112_vm9, %vm1113_vm8  ;;  %v1133_v47 = vand.u32 2147483648, %v1064_v24  ;;  %v1131_v37 = vand.u32 2147483647, %v1064_v24 }
 0x683   :  { %1318 = vst [vmem:[%s2407_s11 + $0x8] sm:$0xff] %v1105_v32  ;;  %v1109_v44 = vsub.f32 1.0, %v1108_v40  ;;  %vm1127_vm13 = vweird.f32 %v1064_v24 }
 0x684   :  { %v980_v41 = vpop.f32.mrf.mxu1  ;;  %v1134_v53 = vor.u32 1.1754944e-38, %v1133_v47  ;;  %vm1132_vm15 = vcmp.eq.f32.partialorder %v1131_v37, 8.507059e+37 }
 0x685   :  { %v1110_v43 = vmul.f32 %v1625_v22, %v1109_v44  ;;  %v981_v38 = vadd.f32 %v2328_v30, %v980_v41 }
 0x687   :  { %v1627_v1 = vpop.eup %1626  ;;  %v1111_v42 = vadd.f32 %v1625_v22, %v1110_v43  ;;  %v1542_v39 = vmul.f32 -1.442695, %v981_v38 }
 0x688   :  { %v1629_v5 = vpop.eup %1628  ;;  %v1065_v27 = vadd.f32 1.0, %v1627_v1 }
 0x689   :  { %v1115_v45 = vsel %vm1114_vm10, %v1625_v22, %v1111_v42  ;;  %v1123_v46 = vmul.f32 %v1629_v5, %v1064_v24  ;;  %1630 = vpow2.f32 %v1542_v39  ;;  %vm1128_vm12 = vweird.f32 %v1629_v5 }
 0x68a   :  { %v1120_v28 = vsel %vm1117_vm11, %v1119_v26, %v1115_v45  ;;  %1632 = vrcp.f32 %v1065_v27  ;;  %vm1129_vm14 = vmor %vm1127_vm13, %vm1128_vm12  ;;  %v1148_v59 = vand.u32 2147483648, %v1065_v27  ;;  %v1146_v62 = vand.u32 2147483647, %v1065_v27 }
 0x68b   :  { %1319 = vst [vmem:[%s2407_s11 + $0x10] sm:$0xff] %v1120_v28  ;;  %v1124_v29 = vsub.f32 1.0, %v1123_v46  ;;  %vm1142_vm1 = vweird.f32 %v1065_v27 }
 0x68c   :  { %v983_v48 = vpop.f32.mrf.mxu1  ;;  %v1149_v6 = vor.u32 1.1754944e-38, %v1148_v59  ;;  %vm1147_vm3 = vcmp.eq.f32.partialorder %v1146_v62, 8.507059e+37 }
 0x68d   :  { %v1125_v31 = vmul.f32 %v1629_v5, %v1124_v29  ;;  %v984_v49 = vadd.f32 %v2328_v30, %v983_v48 }
 0x68f   :  { %v1631_v51 = vpop.eup %1630  ;;  %v1126_v7 = vadd.f32 %v1629_v5, %v1125_v31  ;;  %v1543_v50 = vmul.f32 -1.442695, %v984_v49 }
 0x690   :  { %v1633_v52 = vpop.eup %1632  ;;  %v1066_v55 = vadd.f32 1.0, %v1631_v51 }
 0x691   :  { %v1130_v56 = vsel %vm1129_vm14, %v1629_v5, %v1126_v7  ;;  %v1138_v33 = vmul.f32 %v1633_v52, %v1065_v27  ;;  %1634 = vpow2.f32 %v1543_v50  ;;  %vm1143_vm0 = vweird.f32 %v1633_v52 }
 0x692   :  { %v1135_v54 = vsel %vm1132_vm15, %v1134_v53, %v1130_v56  ;;  %1636 = vrcp.f32 %v1066_v55  ;;  %vm1144_vm2 = vmor %vm1142_vm1, %vm1143_vm0  ;;  %v1163_v13 = vand.u32 2147483648, %v1066_v55  ;;  %v1161_v15 = vand.u32 2147483647, %v1066_v55 }
 0x693   :  { %1320 = vst [vmem:[%s2407_s11 + $0x18] sm:$0xff] %v1135_v54  ;;  %v1139_v58 = vsub.f32 1.0, %v1138_v33  ;;  %vm1157_vm5 = vweird.f32 %v1066_v55 }
 0x694   :  { %v986_v60 = vpop.f32.mrf.mxu1  ;;  %v1164_v20 = vor.u32 1.1754944e-38, %v1163_v13  ;;  %vm1162_vm7 = vcmp.eq.f32.partialorder %v1161_v15, 8.507059e+37 }
 0x695   :  { %v1140_v61 = vmul.f32 %v1633_v52, %v1139_v58  ;;  %v987_v63 = vadd.f32 %v2328_v30, %v986_v60 }
 0x697   :  { %v1635_v0 = vpop.eup %1634  ;;  %v1141_v2 = vadd.f32 %v1633_v52, %v1140_v61  ;;  %v1544_v3 = vmul.f32 -1.442695, %v987_v63 }
 0x698   :  { %v1637_v4 = vpop.eup %1636  ;;  %v1067_v8 = vadd.f32 1.0, %v1635_v0 }
 0x699   :  { %v1145_v9 = vsel %vm1144_vm2, %v1633_v52, %v1141_v2  ;;  %v1153_v10 = vmul.f32 %v1637_v4, %v1066_v55  ;;  %1638 = vpow2.f32 %v1544_v3  ;;  %vm1158_vm4 = vweird.f32 %v1637_v4 }
 0x69a   :  { %v1150_v11 = vsel %vm1147_vm3, %v1149_v6, %v1145_v9  ;;  %1640 = vrcp.f32 %v1067_v8  ;;  %vm1159_vm6 = vmor %vm1157_vm5, %vm1158_vm4  ;;  %v1178_v40 = vand.u32 2147483648, %v1067_v8  ;;  %v1176_v34 = vand.u32 2147483647, %v1067_v8 }
 0x69b   :  { %1321 = vst [vmem:[%s2407_s11 + $0x20] sm:$0xff] %v1150_v11  ;;  %v1154_v12 = vsub.f32 1.0, %v1153_v10  ;;  %vm1172_vm9 = vweird.f32 %v1067_v8 }
 0x69c   :  { %v989_v14 = vpop.f32.mrf.mxu1  ;;  %v1179_v42 = vor.u32 1.1754944e-38, %v1178_v40  ;;  %vm1177_vm11 = vcmp.eq.f32.partialorder %v1176_v34, 8.507059e+37 }
 0x69d   :  { %v1155_v57 = vmul.f32 %v1637_v4, %v1154_v12  ;;  %v990_v16 = vadd.f32 %v2328_v30, %v989_v14 }
 0x69f   :  { %v1639_v17 = vpop.eup %1638  ;;  %v1156_v18 = vadd.f32 %v1637_v4, %v1155_v57  ;;  %v1545_v19 = vmul.f32 -1.442695, %v990_v16 }
 0x6a0   :  { %v1641_v36 = vpop.eup %1640  ;;  %v1068_v21 = vadd.f32 1.0, %v1639_v17 }
 0x6a1   :  { %v1160_v22 = vsel %vm1159_vm6, %v1637_v4, %v1156_v18  ;;  %v1168_v23 = vmul.f32 %v1641_v36, %v1067_v8  ;;  %1642 = vpow2.f32 %v1545_v19  ;;  %vm1173_vm8 = vweird.f32 %v1641_v36 }
 0x6a2   :  { %v1165_v24 = vsel %vm1162_vm7, %v1164_v20, %v1160_v22  ;;  %1644 = vrcp.f32 %v1068_v21  ;;  %vm1174_vm10 = vmor %vm1172_vm9, %vm1173_vm8  ;;  %v1193_v46 = vand.u32 2147483648, %v1068_v21  ;;  %v1191_v47 = vand.u32 2147483647, %v1068_v21 }
 0x6a3   :  { %1322 = vst [vmem:[%s2407_s11 + $0x28] sm:$0xff] %v1165_v24  ;;  %v1169_v25 = vsub.f32 1.0, %v1168_v23  ;;  %vm1187_vm13 = vweird.f32 %v1068_v21 }
 0x6a4   :  { %v992_v32 = vpop.f32.mrf.mxu1  ;;  %v1194_v7 = vor.u32 1.1754944e-38, %v1193_v46  ;;  %vm1192_vm15 = vcmp.eq.f32.partialorder %v1191_v47, 8.507059e+37 }
 0x6a5   :  { %v1170_v44 = vmul.f32 %v1641_v36, %v1169_v25  ;;  %v993_v41 = vadd.f32 %v2328_v30, %v992_v32 }
 0x6a7   :  { %v1643_v43 = vpop.eup %1642  ;;  %v1171_v35 = vadd.f32 %v1641_v36, %v1170_v44  ;;  %v1546_v38 = vmul.f32 -1.442695, %v993_v41 }
 0x6a8   :  { %v1645_v1 = vpop.eup %1644  ;;  %v1069_v39 = vadd.f32 1.0, %v1643_v43 }
 0x6a9   :  { %v1175_v5 = vsel %vm1174_vm10, %v1641_v36, %v1171_v35  ;;  %v1183_v26 = vmul.f32 %v1645_v1, %v1068_v21  ;;  %1646 = vpow2.f32 %v1546_v38  ;;  %vm1188_vm12 = vweird.f32 %v1645_v1 }
 0x6aa   :  { %v1180_v27 = vsel %vm1177_vm11, %v1179_v42, %v1175_v5  ;;  %1648 = vrcp.f32 %v1069_v39  ;;  %vm1189_vm14 = vmor %vm1187_vm13, %vm1188_vm12  ;;  %v1208_v33 = vand.u32 2147483648, %v1069_v39  ;;  %v1206_v59 = vand.u32 2147483647, %v1069_v39 }
 0x6ab   :  { %1323 = vst [vmem:[%s2407_s11 + $0x30] sm:$0xff] %v1180_v27  ;;  %v1184_v45 = vsub.f32 1.0, %v1183_v26  ;;  %vm1202_vm1 = vweird.f32 %v1069_v39 }
 0x6ac   :  { %v995_v28 = vpop.f32.mrf.mxu1  ;;  %v1209_v2 = vor.u32 1.1754944e-38, %v1208_v33  ;;  %vm1207_vm3 = vcmp.eq.f32.partialorder %v1206_v59, 8.507059e+37 }
 0x6ad   :  { %v1185_v29 = vmul.f32 %v1645_v1, %v1184_v45  ;;  %v996_v48 = vadd.f32 %v2328_v30, %v995_v28 }
 0x6af   :  { %v1647_v31 = vpop.eup %1646  ;;  %v1186_v37 = vadd.f32 %v1645_v1, %v1185_v29  ;;  %v1547_v49 = vmul.f32 -1.442695, %v996_v48 }
 0x6b0   :  { %v1649_v51 = vpop.eup %1648  ;;  %v1070_v50 = vadd.f32 1.0, %v1647_v31 }
 0x6b1   :  { %v1190_v52 = vsel %vm1189_vm14, %v1645_v1, %v1186_v37  ;;  %v1198_v53 = vmul.f32 %v1649_v51, %v1069_v39  ;;  %1650 = vpow2.f32 %v1547_v49  ;;  %vm1203_vm0 = vweird.f32 %v1649_v51 }
 0x6b2   :  { %v1195_v55 = vsel %vm1192_vm15, %v1194_v7, %v1190_v52  ;;  %1652 = vrcp.f32 %v1070_v50  ;;  %vm1204_vm2 = vmor %vm1202_vm1, %vm1203_vm0  ;;  %v1223_v10 = vand.u32 2147483648, %v1070_v50  ;;  %v1221_v13 = vand.u32 2147483647, %v1070_v50 }
 0x6b3   :  { %1324 = vst [vmem:[%s2407_s11 + $0x38] sm:$0xff] %v1195_v55  ;;  %v1199_v56 = vsub.f32 1.0, %v1198_v53  ;;  %vm1217_vm5 = vweird.f32 %v1070_v50 }
 0x6b4   :  { %v998_v54 = vpop.f32.mrf.mxu1  ;;  %v1224_v18 = vor.u32 1.1754944e-38, %v1223_v10  ;;  %vm1222_vm7 = vcmp.eq.f32.partialorder %v1221_v13, 8.507059e+37 }
 0x6b5   :  { %v1200_v58 = vmul.f32 %v1649_v51, %v1199_v56  ;;  %v999_v60 = vadd.f32 %v2328_v30, %v998_v54 }
 0x6b7   :  { %v1651_v61 = vpop.eup %1650  ;;  %v1201_v62 = vadd.f32 %v1649_v51, %v1200_v58  ;;  %v1548_v63 = vmul.f32 -1.442695, %v999_v60 }
 0x6b8   :  { %v1653_v0 = vpop.eup %1652  ;;  %v1071_v3 = vadd.f32 1.0, %v1651_v61 }
 0x6b9   :  { %v1205_v4 = vsel %vm1204_vm2, %v1649_v51, %v1201_v62  ;;  %v1213_v6 = vmul.f32 %v1653_v0, %v1070_v50  ;;  %1654 = vpow2.f32 %v1548_v63  ;;  %vm1218_vm4 = vweird.f32 %v1653_v0 }
 0x6ba   :  { %v1210_v8 = vsel %vm1207_vm3, %v1209_v2, %v1205_v4  ;;  %1656 = vrcp.f32 %v1071_v3  ;;  %vm1219_vm6 = vmor %vm1217_vm5, %vm1218_vm4  ;;  %v1238_v23 = vand.u32 2147483648, %v1071_v3  ;;  %v1236_v40 = vand.u32 2147483647, %v1071_v3 }
 0x6bb   :  { %1325 = vst [vmem:[%s2407_s11 + $0x40] sm:$0xff] %v1210_v8  ;;  %v1214_v9 = vsub.f32 1.0, %v1213_v6  ;;  %vm1232_vm9 = vweird.f32 %v1071_v3 }
 0x6bc   :  { %v1001_v11 = vpop.f32.mrf.mxu1  ;;  %v1239_v35 = vor.u32 1.1754944e-38, %v1238_v23  ;;  %vm1237_vm11 = vcmp.eq.f32.partialorder %v1236_v40, 8.507059e+37 }
 0x6bd   :  { %v1215_v12 = vmul.f32 %v1653_v0, %v1214_v9  ;;  %v1002_v14 = vadd.f32 %v2328_v30, %v1001_v11 }
 0x6bf   :  { %v1655_v57 = vpop.eup %1654  ;;  %v1216_v15 = vadd.f32 %v1653_v0, %v1215_v12  ;;  %v1549_v16 = vmul.f32 -1.442695, %v1002_v14 }
 0x6c0   :  { %v1657_v17 = vpop.eup %1656  ;;  %v1072_v19 = vadd.f32 1.0, %v1655_v57 }
 0x6c1   :  { %v1220_v36 = vsel %vm1219_vm6, %v1653_v0, %v1216_v15  ;;  %v1228_v20 = vmul.f32 %v1657_v17, %v1071_v3  ;;  %1658 = vpow2.f32 %v1549_v16  ;;  %vm1233_vm8 = vweird.f32 %v1657_v17 }
 0x6c2   :  { %v1225_v21 = vsel %vm1222_vm7, %v1224_v18, %v1220_v36  ;;  %1660 = vrcp.f32 %v1072_v19  ;;  %vm1234_vm10 = vmor %vm1232_vm9, %vm1233_vm8  ;;  %v1253_v26 = vand.u32 2147483648, %v1072_v19  ;;  %v1251_v46 = vand.u32 2147483647, %v1072_v19 }
 0x6c3   :  { %1326 = vst [vmem:[%s2407_s11 + $0x48] sm:$0xff] %v1225_v21  ;;  %v1229_v22 = vsub.f32 1.0, %v1228_v20  ;;  %vm1247_vm13 = vweird.f32 %v1072_v19 }
 0x6c4   :  { %v1004_v24 = vpop.f32.mrf.mxu1  ;;  %v1254_v37 = vor.u32 1.1754944e-38, %v1253_v26  ;;  %vm1252_vm15 = vcmp.eq.f32.partialorder %v1251_v46, 8.507059e+37 }
 0x6c5   :  { %v1230_v25 = vmul.f32 %v1657_v17, %v1229_v22  ;;  %v1005_v32 = vadd.f32 %v2328_v30, %v1004_v24 }
 0x6c7   :  { %v1659_v44 = vpop.eup %1658  ;;  %v1231_v34 = vadd.f32 %v1657_v17, %v1230_v25  ;;  %v1550_v41 = vmul.f32 -1.442695, %v1005_v32 }
 0x6c8   :  { %v1661_v43 = vpop.eup %1660  ;;  %v1073_v38 = vadd.f32 1.0, %v1659_v44 }
 0x6c9   :  { %v1235_v1 = vsel %vm1234_vm10, %v1657_v17, %v1231_v34  ;;  %v1243_v42 = vmul.f32 %v1661_v43, %v1072_v19  ;;  %1662 = vpow2.f32 %v1550_v41  ;;  %vm1248_vm12 = vweird.f32 %v1661_v43 }
 0x6ca   :  { %v1240_v39 = vsel %vm1237_vm11, %v1239_v35, %v1235_v1  ;;  %1664 = vrcp.f32 %v1073_v38  ;;  %vm1249_vm14 = vmor %vm1247_vm13, %vm1248_vm12  ;;  %v1268_v53 = vand.u32 2147483648, %v1073_v38  ;;  %v1266_v33 = vand.u32 2147483647, %v1073_v38 }
 0x6cb   :  { %1327 = vst [vmem:[%s2407_s11 + $0x50] sm:$0xff] %v1240_v39  ;;  %v1244_v5 = vsub.f32 1.0, %v1243_v42  ;;  %vm1262_vm1 = vweird.f32 %v1073_v38 }
 0x6cc   :  { %v1007_v27 = vpop.f32.mrf.mxu1  ;;  %v1269_v62 = vor.u32 1.1754944e-38, %v1268_v53  ;;  %vm1267_vm3 = vcmp.eq.f32.partialorder %v1266_v33, 8.507059e+37 }
 0x6cd   :  { %v1245_v45 = vmul.f32 %v1661_v43, %v1244_v5  ;;  %v1008_v28 = vadd.f32 %v2328_v30, %v1007_v27 }
 0x6cf   :  { %v1663_v29 = vpop.eup %1662  ;;  %v1246_v47 = vadd.f32 %v1661_v43, %v1245_v45  ;;  %v1551_v48 = vmul.f32 -1.442695, %v1008_v28 }
 0x6d0   :  { %v1665_v31 = vpop.eup %1664  ;;  %v1074_v49 = vadd.f32 1.0, %v1663_v29 }
 0x6d1   :  { %v1250_v51 = vsel %vm1249_vm14, %v1661_v43, %v1246_v47  ;;  %v1258_v7 = vmul.f32 %v1665_v31, %v1073_v38  ;;  %1666 = vpow2.f32 %v1551_v48  ;;  %vm1263_vm0 = vweird.f32 %v1665_v31 }
 0x6d2   :  { %v1255_v50 = vsel %vm1252_vm15, %v1254_v37, %v1250_v51  ;;  %1668 = vrcp.f32 %v1074_v49  ;;  %vm1264_vm2 = vmor %vm1262_vm1, %vm1263_vm0  ;;  %v1281_v8 = vand.u32 2147483647, %v1074_v49  ;;  %vm1277_vm5 = vweird.f32 %v1074_v49 }
 0x6d3   :  { %1328 = vst [vmem:[%s2407_s11 + $0x58] sm:$0xff] %v1255_v50  ;;  %v1259_v52 = vsub.f32 1.0, %v1258_v7 }
 0x6d4   :  { %v1010_v55 = vpop.f32.mrf.mxu1  ;;  %vm1282_vm7 = vcmp.eq.f32.partialorder %v1281_v8, 8.507059e+37 }
 0x6d5   :  { %v1260_v56 = vmul.f32 %v1665_v31, %v1259_v52  ;;  %v1011_v54 = vadd.f32 %v2328_v30, %v1010_v55  ;;  %v1283_v30 = vand.u32 2147483648, %v1074_v49 }
 0x6d7   :  { %v1667_v58 = vpop.eup %1666  ;;  %v1261_v59 = vadd.f32 %v1665_v31, %v1260_v56  ;;  %v1552_v60 = vmul.f32 -1.442695, %v1011_v54  ;;  %v1284_v12 = vor.u32 1.1754944e-38, %v1283_v30 }
 0x6d8   :  { %v1669_v61 = vpop.eup %1668  ;;  %v1075_v63 = vadd.f32 1.0, %v1667_v58 }
 0x6d9   :  { %v1265_v0 = vsel %vm1264_vm2, %v1665_v31, %v1261_v59  ;;  %v1273_v2 = vmul.f32 %v1669_v61, %v1074_v49  ;;  %1670 = vpow2.f32 %v1552_v60  ;;  %vm1278_vm4 = vweird.f32 %v1669_v61 }
 0x6da   :  { %v1270_v3 = vsel %vm1267_vm3, %v1269_v62, %v1265_v0  ;;  %1672 = vrcp.f32 %v1075_v63  ;;  %vm1279_vm6 = vmor %vm1277_vm5, %vm1278_vm4  ;;  %v1298_v17 = vand.u32 2147483648, %v1075_v63  ;;  %v1296_v19 = vand.u32 2147483647, %v1075_v63 }
 0x6db   :  { %1329 = vst [vmem:[%s2407_s11 + $0x60] sm:$0xff] %v1270_v3  ;;  %v1274_v4 = vsub.f32 1.0, %v1273_v2  ;;  %vm1292_vm9 = vweird.f32 %v1075_v63 }
 0x6dc   :  { %v1299_v21 = vor.u32 1.1754944e-38, %v1298_v17  ;;  %vm1297_vm11 = vcmp.eq.f32.partialorder %v1296_v19, 8.507059e+37 }
 0x6dd   :  { %v1275_v6 = vmul.f32 %v1669_v61, %v1274_v4 }
 0x6df   :  { %v1671_v9 = vpop.eup %1670  ;;  %v1276_v10 = vadd.f32 %v1669_v61, %v1275_v6 }
 0x6e0   :  { %v1673_v11 = vpop.eup %1672  ;;  %v1076_v13 = vadd.f32 1.0, %v1671_v9 }
 0x6e1   :  { %v1280_v14 = vsel %vm1279_vm6, %v1669_v61, %v1276_v10  ;;  %v1288_v57 = vmul.f32 %v1673_v11, %v1075_v63  ;;  %vm1293_vm8 = vweird.f32 %v1673_v11 }
 0x6e2   :  { %v1285_v15 = vsel %vm1282_vm7, %v1284_v12, %v1280_v14  ;;  %1674 = vrcp.f32 %v1076_v13  ;;  %vm1294_vm10 = vmor %vm1292_vm9, %vm1293_vm8  ;;  %v1313_v40 = vand.u32 2147483648, %v1076_v13  ;;  %v1311_v44 = vand.u32 2147483647, %v1076_v13 }
 0x6e3   :  { %1330 = vst [vmem:[%s2407_s11 + $0x68] sm:$0xff] %v1285_v15  ;;  %v1289_v16 = vsub.f32 1.0, %v1288_v57  ;;  %vm1307_vm13 = vweird.f32 %v1076_v13 }
 0x6e4   :  { %v1314_v41 = vor.u32 1.1754944e-38, %v1313_v40  ;;  %vm1312_vm15 = vcmp.eq.f32.partialorder %v1311_v44, 8.507059e+37 }
 0x6e5   :  { %v1290_v18 = vmul.f32 %v1673_v11, %v1289_v16 }
 0x6e7   :  { %v1291_v36 = vadd.f32 %v1673_v11, %v1290_v18 }
 0x6e8   :  { %v1675_v20 = vpop.eup %1674 }
 0x6e9   :  { %v1295_v22 = vsel %vm1294_vm10, %v1673_v11, %v1291_v36  ;;  %v1303_v23 = vmul.f32 %v1675_v20, %v1076_v13  ;;  %vm1308_vm12 = vweird.f32 %v1675_v20 }
 0x6ea   :  { %v1300_v24 = vsel %vm1297_vm11, %v1299_v21, %v1295_v22  ;;  %vm1309_vm14 = vmor %vm1307_vm13, %vm1308_vm12 }
 0x6eb   :  { %1331 = vst [vmem:[%s2407_s11 + $0x70] sm:$0xff] %v1300_v24  ;;  %v1304_v25 = vsub.f32 1.0, %v1303_v23 }
 0x6ed   :  { %v1305_v32 = vmul.f32 %v1675_v20, %v1304_v25 }
 0x6ef   :  { %v1306_v34 = vadd.f32 %v1675_v20, %v1305_v32 }
 0x6f1   :  { %v1310_v43 = vsel %vm1309_vm14, %v1675_v20, %v1306_v34 }
 0x6f2   :  { %v1315_v35 = vsel %vm1312_vm15, %v1314_v41, %v1310_v43 }
 0x6f3   :  { %1332 = vst [vmem:[%s2407_s11 + $0x78] sm:$0xff] %v1315_v35 }

</bundles_post_ra>
